<compile_context>
chip_gen: v5e
topology: v5e:2x2
jax: 0.10.0
libtpu: 0.0.40
codegen_flags: <defaults>
</compile_context>

<pallas_src>
import functools

import jax
import jax.numpy as jnp
from jax import lax
from jax.experimental import pallas as pl
from jax.experimental.pallas import tpu as pltpu


def _fused_skip_block_kernel(x_ref,
                             wd_ref, bd_ref,   # down  : (9, sub_ngf, ngf),     (sub_ngf, 1)
                             wi_ref, bi_ref,   # inner : (9, sub_ngf, sub_ngf), (sub_ngf, 1)
                             wu_ref, bu_ref,   # up    : (9, ngf, sub_ngf),     (ngf, 1)
                             wf_ref, bf_ref,   # flat  : (9, ngf, ngf),         (ngf, 1)
                             o_ref,            # (ngf, H*W)   (batch dim squeezed)
                             *, H, W, matmul_dtype):
    """One batch sample per grid step. All intermediates stay VMEM/vreg resident."""
    HW = H * W
    f32 = jnp.float32

    # ---- boundary masks, built once per grid step and shared by all 4 convs ----
    col = lax.broadcasted_iota(jnp.int32, (1, HW), 1)      # flat pixel index
    w_in_row = col % W
    row_masks = {-1: col >= W, 0: None, 1: col < (H - 1) * W}
    col_masks = {-1: w_in_row >= 1, 0: None, 1: w_in_row < (W - 1)}

    def conv_bn_relu(act, w_ref, b_ref):
        # act: (cin, HW) f32, lane-dense.
        # 3x3 SAME conv = 9 lane-rolled + boundary-masked taps, each one MXU matmul
        # (cout, cin) x (cin, HW), accumulated in f32.  Rolls use the XLU slot.
        cout = w_ref.shape[1]
        acc = jnp.zeros((cout, HW), f32)
        for ky in range(3):
            for kx in range(3):
                dy, dx = ky - 1, kx - 1
                shift = (-(dy * W + dx)) % HW               # static Python int
                shifted = act if shift == 0 else pltpu.roll(act, shift=shift, axis=1)
                rm, cm = row_masks[dy], col_masks[dx]
                if rm is not None and cm is not None:
                    mask = jnp.logical_and(rm, cm)
                elif rm is not None:
                    mask = rm
                else:
                    mask = cm
                if mask is not None:
                    shifted = jnp.where(mask, shifted, 0.0)  # zero padding (f32 VPU)
                w_tap = w_ref[ky * 3 + kx]                   # (cout, cin), static index
                acc = acc + jnp.dot(w_tap,
                                    shifted.astype(matmul_dtype),
                                    preferred_element_type=f32)
        # Folded-BN bias + ReLU, kept in f32 on the VPU.
        return jnp.maximum(acc + b_ref[...], 0.0)

    x = x_ref[...].astype(f32)                               # (ngf, HW), lane-dense

    d = conv_bn_relu(x, wd_ref, bd_ref)                      # down_block   (sub_ngf, HW)
    s = conv_bn_relu(d, wi_ref, bi_ref)                      # submodule    (sub_ngf, HW)
    y = x + conv_bn_relu(s, wu_ref, bu_ref)                  # skip + up    (ngf, HW)
    out = conv_bn_relu(y, wf_ref, bf_ref)                    # flat_block   (ngf, HW)

    o_ref[...] = out.astype(o_ref.dtype)


def _fold_bn_into_weight(w, scale, bias, matmul_dtype):
    """Fold eval-mode BN scale into the conv weight, reorder for the kernel.

    w: (3, 3, Cin, Cout) HWIO, scale/bias: (Cout,).
    Returns taps: (9, Cout, Cin) in matmul_dtype, b: (Cout, 1) float32.
    """
    cin, cout = w.shape[2], w.shape[3]
    w_scaled = w * scale.reshape(1, 1, 1, cout)
    taps = jnp.transpose(w_scaled.reshape(9, cin, cout), (0, 2, 1))   # (9, cout, cin)
    return taps.astype(matmul_dtype), bias.reshape(cout, 1).astype(jnp.float32)


def skip_connection_block_forward(x_nchw, params, *, matmul_dtype=jnp.float32):
    """x_nchw: (N, ngf, H, W) float32 (PyTorch layout). Returns (N, ngf, H, W)."""
    N, ngf, H, W = x_nchw.shape
    HW = H * W
    sub_ngf = params["down"][0].shape[-1]

    wd, bd = _fold_bn_into_weight(*params["down"], matmul_dtype)
    wi, bi = _fold_bn_into_weight(*params["inner_flat"], matmul_dtype)
    wu, bu = _fold_bn_into_weight(*params["up"], matmul_dtype)
    wf, bf = _fold_bn_into_weight(*params["outer_flat"], matmul_dtype)

    # Free metadata reshape: NCHW is contiguous, so (N, C, H*W) costs nothing and
    # gives the kernel a 256-lane-dense input block.
    x_flat = x_nchw.reshape(N, ngf, HW)

    kernel = functools.partial(_fused_skip_block_kernel,
                               H=H, W=W, matmul_dtype=matmul_dtype)

    const2 = lambda n: (0, 0)       # bias blocks: same tile every grid step
    const3 = lambda n: (0, 0, 0)    # weight blocks: same tile every grid step

    out_flat = pl.pallas_call(
        kernel,
        out_shape=jax.ShapeDtypeStruct((N, ngf, HW), x_nchw.dtype),
        grid_spec=pltpu.PrefetchScalarGridSpec(
            num_scalar_prefetch=0,
            grid=(N,),
            in_specs=[
                pl.BlockSpec((None, ngf, HW), lambda n: (n, 0, 0)),      # x (one sample)
                pl.BlockSpec((9, sub_ngf, ngf), const3),                 # w_down
                pl.BlockSpec((sub_ngf, 1), const2),                      # b_down
                pl.BlockSpec((9, sub_ngf, sub_ngf), const3),             # w_inner
                pl.BlockSpec((sub_ngf, 1), const2),                      # b_inner
                pl.BlockSpec((9, ngf, sub_ngf), const3),                 # w_up
                pl.BlockSpec((ngf, 1), const2),                          # b_up
                pl.BlockSpec((9, ngf, ngf), const3),                     # w_flat
                pl.BlockSpec((ngf, 1), const2),                          # b_flat
            ],
            out_specs=pl.BlockSpec((None, ngf, HW), lambda n: (n, 0, 0)),
        ),
        compiler_params=pltpu.CompilerParams(
            dimension_semantics=("parallel",)),          # shard N over TCs (v7x)
    )(x_flat, wd, bd, wi, bi, wu, bu, wf, bf)

    return out_flat.reshape(N, ngf, H, W)


def make_conv_bn_params(key, cin, cout):
    """Deterministic conv weight (HWIO) + eval-mode BatchNorm2d scale/bias."""
    kw, kg, kb, km, kv = jax.random.split(key, 5)
    w = jax.random.normal(kw, (3, 3, cin, cout), jnp.float32) / jnp.sqrt(9.0 * cin)
    gamma = 1.0 + 0.1 * jax.random.normal(kg, (cout,), jnp.float32)
    beta = 0.1 * jax.random.normal(kb, (cout,), jnp.float32)
    running_mean = 0.1 * jax.random.normal(km, (cout,), jnp.float32)
    running_var = jnp.abs(jax.random.normal(kv, (cout,), jnp.float32)) + 0.5
    eps = 1e-5
    scale = gamma / jnp.sqrt(running_var + eps)
    bias = beta - running_mean * scale
    return w, scale, bias


# ---------------- pure-JAX reference (for correctness check) ----------------
def _conv3x3_bn_relu_ref(x, w, scale, bias, skip=None):
    y = lax.conv_general_dilated(
        x, w, window_strides=(1, 1), padding="SAME",
        dimension_numbers=("NCHW", "HWIO", "NCHW"),
        precision=lax.Precision.HIGHEST)
    y = y * scale.reshape(1, -1, 1, 1) + bias.reshape(1, -1, 1, 1)
    y = jnp.maximum(y, 0.0)
    if skip is not None:
        y = y + skip
    return y


def _forward_ref(x_nchw, params):
    d = _conv3x3_bn_relu_ref(x_nchw, *params["down"])
    s = _conv3x3_bn_relu_ref(d, *params["inner_flat"])
    y = _conv3x3_bn_relu_ref(s, *params["up"], skip=x_nchw)
    return _conv3x3_bn_relu_ref(y, *params["outer_flat"])


if __name__ == "__main__":
    ngf, sub_ngf = 4, 8
    N, H, W = 2, 16, 16

    root = jax.random.PRNGKey(0)
    kx, kd, ki, ku, kf = jax.random.split(root, 5)

    # PyTorch-convention NCHW input: (2, 4, 16, 16).
    x_nchw = jax.random.normal(kx, (N, ngf, H, W), jnp.float32)

    params = {
        "down":       make_conv_bn_params(kd, ngf, sub_ngf),
        "inner_flat": make_conv_bn_params(ki, sub_ngf, sub_ngf),
        "up":         make_conv_bn_params(ku, sub_ngf, ngf),
        "outer_flat": make_conv_bn_params(kf, ngf, ngf),
    }

    ref = jax.block_until_ready(_forward_ref(x_nchw, params))

    # f32 MXU operands (default; safest numerics, MXU is not the bottleneck here).
    fwd_f32 = jax.jit(functools.partial(skip_connection_block_forward,
                                        matmul_dtype=jnp.float32))
    out = jax.block_until_ready(fwd_f32(x_nchw, params))
    assert out.shape == (N, ngf, H, W)
    err = jnp.max(jnp.abs(out - ref))
    assert jnp.allclose(out, ref, atol=1e-3, rtol=1e-3), f"f32 max abs err {err}"

    # bf16 MXU operands (v6e/v7x recommendation): f32 accumulate, f32 elementwise.
    fwd_bf16 = jax.jit(functools.partial(skip_connection_block_forward,
                                         matmul_dtype=jnp.bfloat16))
    out_bf16 = jax.block_until_ready(fwd_bf16(x_nchw, params))
    err_bf16 = jnp.max(jnp.abs(out_bf16 - ref))
    assert jnp.allclose(out_bf16, ref, atol=5e-2, rtol=5e-2), \
        f"bf16 max abs err {err_bf16}"

    print("KERNEL_OK")
</pallas_src>

<mosaic_0001>
module attributes {stable_mosaic.version = 11 : i64} {
  func.func @_fused_skip_block_kernel(%arg0: i32, %arg1: memref<1x4x256xf32, #tpu.memory_space<vmem>>, %arg2: memref<9x8x4xf32, #tpu.memory_space<vmem>>, %arg3: memref<8x1xf32, #tpu.memory_space<vmem>>, %arg4: memref<9x8x8xf32, #tpu.memory_space<vmem>>, %arg5: memref<8x1xf32, #tpu.memory_space<vmem>>, %arg6: memref<9x4x8xf32, #tpu.memory_space<vmem>>, %arg7: memref<4x1xf32, #tpu.memory_space<vmem>>, %arg8: memref<9x4x4xf32, #tpu.memory_space<vmem>>, %arg9: memref<4x1xf32, #tpu.memory_space<vmem>>, %arg10: memref<1x4x256xf32, #tpu.memory_space<vmem>>) attributes {dimension_semantics = [#tpu.dimension_semantics<parallel>], iteration_bounds = array<i64: 2>, scalar_prefetch = 0 : i64, scratch_operands = 0 : i64, tpu.core_type = #tpu.core_type<tc>, window_params = [{transform_indices = @transform_0, window_bounds = array<i64: 1, 4, 256>}, {pipeline_mode = #tpu.pipeline_mode<synchronous>, transform_indices = @transform_1, window_bounds = array<i64: 9, 8, 4>}, {pipeline_mode = #tpu.pipeline_mode<synchronous>, transform_indices = @transform_2, window_bounds = array<i64: 8, 1>}, {pipeline_mode = #tpu.pipeline_mode<synchronous>, transform_indices = @transform_3, window_bounds = array<i64: 9, 8, 8>}, {pipeline_mode = #tpu.pipeline_mode<synchronous>, transform_indices = @transform_4, window_bounds = array<i64: 8, 1>}, {pipeline_mode = #tpu.pipeline_mode<synchronous>, transform_indices = @transform_5, window_bounds = array<i64: 9, 4, 8>}, {pipeline_mode = #tpu.pipeline_mode<synchronous>, transform_indices = @transform_6, window_bounds = array<i64: 4, 1>}, {pipeline_mode = #tpu.pipeline_mode<synchronous>, transform_indices = @transform_7, window_bounds = array<i64: 9, 4, 4>}, {pipeline_mode = #tpu.pipeline_mode<synchronous>, transform_indices = @transform_8, window_bounds = array<i64: 4, 1>}, {transform_indices = @transform_9, window_bounds = array<i64: 1, 4, 256>}]} {
    %0 = tpu.iota {dimensions = array<i32: 1>} : vector<1x256xi32>
    %c16_i32 = arith.constant 16 : i32
    %c0_i32 = arith.constant 0 : i32
    %1 = arith.cmpi eq, %c16_i32, %c0_i32 : i32
    %c1_i32 = arith.constant 1 : i32
    %2 = arith.select %1, %c1_i32, %c16_i32 : i32
    %3 = vector.broadcast %2 : i32 to vector<1x256xi32>
    %4 = arith.remsi %0, %3 : vector<1x256xi32>
    %c0_i32_0 = arith.constant 0 : i32
    %5 = vector.broadcast %c0_i32_0 : i32 to vector<1x256xi32>
    %6 = arith.cmpi ne, %4, %5 : vector<1x256xi32>
    %c0_i32_1 = arith.constant 0 : i32
    %7 = vector.broadcast %c0_i32_1 : i32 to vector<1x256xi32>
    %8 = arith.cmpi slt, %4, %7 : vector<1x256xi32>
    %c0_i32_2 = arith.constant 0 : i32
    %9 = arith.cmpi slt, %2, %c0_i32_2 : i32
    %10 = vector.broadcast %9 : i1 to vector<1x256xi1>
    %11 = vector.broadcast %10 : vector<1x256xi1> to vector<1x256xi1>
    %12 = arith.xori %8, %11 : vector<1x256xi1>
    %13 = arith.andi %12, %6 : vector<1x256xi1>
    %14 = vector.broadcast %2 : i32 to vector<1x256xi32>
    %15 = arith.addi %4, %14 : vector<1x256xi32>
    %16 = arith.select %13, %15, %4 : vector<1x256xi1>, vector<1x256xi32>
    %c16_i32_3 = arith.constant 16 : i32
    %17 = vector.broadcast %c16_i32_3 : i32 to vector<1x256xi32>
    %18 = arith.cmpi sge, %0, %17 : vector<1x256xi32>
    %c240_i32 = arith.constant 240 : i32
    %19 = vector.broadcast %c240_i32 : i32 to vector<1x256xi32>
    %20 = arith.cmpi slt, %0, %19 : vector<1x256xi32>
    %c1_i32_4 = arith.constant 1 : i32
    %21 = vector.broadcast %c1_i32_4 : i32 to vector<1x256xi32>
    %22 = arith.cmpi sge, %16, %21 : vector<1x256xi32>
    %c15_i32 = arith.constant 15 : i32
    %23 = vector.broadcast %c15_i32 : i32 to vector<1x256xi32>
    %24 = arith.cmpi slt, %16, %23 : vector<1x256xi32>
    %c0 = arith.constant 0 : index
    %c0_5 = arith.constant 0 : index
    %c0_6 = arith.constant 0 : index
    %25 = vector.load %arg1[%c0, %c0_5, %c0_6] : memref<1x4x256xf32, #tpu.memory_space<vmem>>, vector<1x4x256xf32>
    %26 = vector.shape_cast %25 : vector<1x4x256xf32> to vector<4x256xf32>
    %cst = arith.constant 0.000000e+00 : f32
    %27 = vector.broadcast %cst : f32 to vector<8x256xf32>
    %c17_i32 = arith.constant 17 : i32
    %28 = tpu.dynamic_rotate %26 by %c17_i32 dim 1 : vector<4x256xf32>, i32 -> vector<4x256xf32>
    %29 = arith.andi %18, %22 : vector<1x256xi1>
    %cst_7 = arith.constant 0.000000e+00 : f32
    %30 = vector.shape_cast %29 : vector<1x256xi1> to vector<1x256xi1>
    %31 = vector.broadcast %30 : vector<1x256xi1> to vector<4x256xi1>
    %32 = vector.broadcast %cst_7 : f32 to vector<4x256xf32>
    %33 = arith.select %31, %28, %32 : vector<4x256xi1>, vector<4x256xf32>
    %c0_8 = arith.constant 0 : index
    %c0_9 = arith.constant 0 : index
    %c0_10 = arith.constant 0 : index
    %34 = vector.load %arg2[%c0_8, %c0_9, %c0_10] : memref<9x8x4xf32, #tpu.memory_space<vmem>>, vector<1x8x4xf32>
    %35 = vector.shape_cast %34 : vector<1x8x4xf32> to vector<8x4xf32>
    %cst_11 = arith.constant dense<0.000000e+00> : vector<8x256xf32>
    %36 = tpu.matmul %35, %33, %cst_11 {dimension_numbers = #tpu.dot_dimension_numbers<[1], [0], [0], [1], [0, 0, 1, 1], [], []>} : vector<8x4xf32>, vector<4x256xf32>, vector<8x256xf32> -> vector<8x256xf32>
    %37 = arith.addf %27, %36 : vector<8x256xf32>
    %c16_i32_12 = arith.constant 16 : i32
    %38 = tpu.dynamic_rotate %26 by %c16_i32_12 dim 1 : vector<4x256xf32>, i32 -> vector<4x256xf32>
    %cst_13 = arith.constant 0.000000e+00 : f32
    %39 = vector.shape_cast %18 : vector<1x256xi1> to vector<1x256xi1>
    %40 = vector.broadcast %39 : vector<1x256xi1> to vector<4x256xi1>
    %41 = vector.broadcast %cst_13 : f32 to vector<4x256xf32>
    %42 = arith.select %40, %38, %41 : vector<4x256xi1>, vector<4x256xf32>
    %c1 = arith.constant 1 : index
    %c0_14 = arith.constant 0 : index
    %c0_15 = arith.constant 0 : index
    %43 = vector.load %arg2[%c1, %c0_14, %c0_15] : memref<9x8x4xf32, #tpu.memory_space<vmem>>, vector<1x8x4xf32>
    %44 = vector.shape_cast %43 : vector<1x8x4xf32> to vector<8x4xf32>
    %cst_16 = arith.constant dense<0.000000e+00> : vector<8x256xf32>
    %45 = tpu.matmul %44, %42, %cst_16 {dimension_numbers = #tpu.dot_dimension_numbers<[1], [0], [0], [1], [0, 0, 1, 1], [], []>} : vector<8x4xf32>, vector<4x256xf32>, vector<8x256xf32> -> vector<8x256xf32>
    %46 = arith.addf %37, %45 : vector<8x256xf32>
    %c15_i32_17 = arith.constant 15 : i32
    %47 = tpu.dynamic_rotate %26 by %c15_i32_17 dim 1 : vector<4x256xf32>, i32 -> vector<4x256xf32>
    %48 = arith.andi %18, %24 : vector<1x256xi1>
    %cst_18 = arith.constant 0.000000e+00 : f32
    %49 = vector.shape_cast %48 : vector<1x256xi1> to vector<1x256xi1>
    %50 = vector.broadcast %49 : vector<1x256xi1> to vector<4x256xi1>
    %51 = vector.broadcast %cst_18 : f32 to vector<4x256xf32>
    %52 = arith.select %50, %47, %51 : vector<4x256xi1>, vector<4x256xf32>
    %c2 = arith.constant 2 : index
    %c0_19 = arith.constant 0 : index
    %c0_20 = arith.constant 0 : index
    %53 = vector.load %arg2[%c2, %c0_19, %c0_20] : memref<9x8x4xf32, #tpu.memory_space<vmem>>, vector<1x8x4xf32>
    %54 = vector.shape_cast %53 : vector<1x8x4xf32> to vector<8x4xf32>
    %cst_21 = arith.constant dense<0.000000e+00> : vector<8x256xf32>
    %55 = tpu.matmul %54, %52, %cst_21 {dimension_numbers = #tpu.dot_dimension_numbers<[1], [0], [0], [1], [0, 0, 1, 1], [], []>} : vector<8x4xf32>, vector<4x256xf32>, vector<8x256xf32> -> vector<8x256xf32>
    %56 = arith.addf %46, %55 : vector<8x256xf32>
    %c1_i32_22 = arith.constant 1 : i32
    %57 = tpu.dynamic_rotate %26 by %c1_i32_22 dim 1 : vector<4x256xf32>, i32 -> vector<4x256xf32>
    %cst_23 = arith.constant 0.000000e+00 : f32
    %58 = vector.shape_cast %22 : vector<1x256xi1> to vector<1x256xi1>
    %59 = vector.broadcast %58 : vector<1x256xi1> to vector<4x256xi1>
    %60 = vector.broadcast %cst_23 : f32 to vector<4x256xf32>
    %61 = arith.select %59, %57, %60 : vector<4x256xi1>, vector<4x256xf32>
    %c3 = arith.constant 3 : index
    %c0_24 = arith.constant 0 : index
    %c0_25 = arith.constant 0 : index
    %62 = vector.load %arg2[%c3, %c0_24, %c0_25] : memref<9x8x4xf32, #tpu.memory_space<vmem>>, vector<1x8x4xf32>
    %63 = vector.shape_cast %62 : vector<1x8x4xf32> to vector<8x4xf32>
    %cst_26 = arith.constant dense<0.000000e+00> : vector<8x256xf32>
    %64 = tpu.matmul %63, %61, %cst_26 {dimension_numbers = #tpu.dot_dimension_numbers<[1], [0], [0], [1], [0, 0, 1, 1], [], []>} : vector<8x4xf32>, vector<4x256xf32>, vector<8x256xf32> -> vector<8x256xf32>
    %65 = arith.addf %56, %64 : vector<8x256xf32>
    %c4 = arith.constant 4 : index
    %c0_27 = arith.constant 0 : index
    %c0_28 = arith.constant 0 : index
    %66 = vector.load %arg2[%c4, %c0_27, %c0_28] : memref<9x8x4xf32, #tpu.memory_space<vmem>>, vector<1x8x4xf32>
    %67 = vector.shape_cast %66 : vector<1x8x4xf32> to vector<8x4xf32>
    %cst_29 = arith.constant dense<0.000000e+00> : vector<8x256xf32>
    %68 = tpu.matmul %67, %26, %cst_29 {dimension_numbers = #tpu.dot_dimension_numbers<[1], [0], [0], [1], [0, 0, 1, 1], [], []>} : vector<8x4xf32>, vector<4x256xf32>, vector<8x256xf32> -> vector<8x256xf32>
    %69 = arith.addf %65, %68 : vector<8x256xf32>
    %c255_i32 = arith.constant 255 : i32
    %70 = tpu.dynamic_rotate %26 by %c255_i32 dim 1 : vector<4x256xf32>, i32 -> vector<4x256xf32>
    %cst_30 = arith.constant 0.000000e+00 : f32
    %71 = vector.shape_cast %24 : vector<1x256xi1> to vector<1x256xi1>
    %72 = vector.broadcast %71 : vector<1x256xi1> to vector<4x256xi1>
    %73 = vector.broadcast %cst_30 : f32 to vector<4x256xf32>
    %74 = arith.select %72, %70, %73 : vector<4x256xi1>, vector<4x256xf32>
    %c5 = arith.constant 5 : index
    %c0_31 = arith.constant 0 : index
    %c0_32 = arith.constant 0 : index
    %75 = vector.load %arg2[%c5, %c0_31, %c0_32] : memref<9x8x4xf32, #tpu.memory_space<vmem>>, vector<1x8x4xf32>
    %76 = vector.shape_cast %75 : vector<1x8x4xf32> to vector<8x4xf32>
    %cst_33 = arith.constant dense<0.000000e+00> : vector<8x256xf32>
    %77 = tpu.matmul %76, %74, %cst_33 {dimension_numbers = #tpu.dot_dimension_numbers<[1], [0], [0], [1], [0, 0, 1, 1], [], []>} : vector<8x4xf32>, vector<4x256xf32>, vector<8x256xf32> -> vector<8x256xf32>
    %78 = arith.addf %69, %77 : vector<8x256xf32>
    %c241_i32 = arith.constant 241 : i32
    %79 = tpu.dynamic_rotate %26 by %c241_i32 dim 1 : vector<4x256xf32>, i32 -> vector<4x256xf32>
    %80 = arith.andi %20, %22 : vector<1x256xi1>
    %cst_34 = arith.constant 0.000000e+00 : f32
    %81 = vector.shape_cast %80 : vector<1x256xi1> to vector<1x256xi1>
    %82 = vector.broadcast %81 : vector<1x256xi1> to vector<4x256xi1>
    %83 = vector.broadcast %cst_34 : f32 to vector<4x256xf32>
    %84 = arith.select %82, %79, %83 : vector<4x256xi1>, vector<4x256xf32>
    %c6 = arith.constant 6 : index
    %c0_35 = arith.constant 0 : index
    %c0_36 = arith.constant 0 : index
    %85 = vector.load %arg2[%c6, %c0_35, %c0_36] : memref<9x8x4xf32, #tpu.memory_space<vmem>>, vector<1x8x4xf32>
    %86 = vector.shape_cast %85 : vector<1x8x4xf32> to vector<8x4xf32>
    %cst_37 = arith.constant dense<0.000000e+00> : vector<8x256xf32>
    %87 = tpu.matmul %86, %84, %cst_37 {dimension_numbers = #tpu.dot_dimension_numbers<[1], [0], [0], [1], [0, 0, 1, 1], [], []>} : vector<8x4xf32>, vector<4x256xf32>, vector<8x256xf32> -> vector<8x256xf32>
    %88 = arith.addf %78, %87 : vector<8x256xf32>
    %c240_i32_38 = arith.constant 240 : i32
    %89 = tpu.dynamic_rotate %26 by %c240_i32_38 dim 1 : vector<4x256xf32>, i32 -> vector<4x256xf32>
    %cst_39 = arith.constant 0.000000e+00 : f32
    %90 = vector.shape_cast %20 : vector<1x256xi1> to vector<1x256xi1>
    %91 = vector.broadcast %90 : vector<1x256xi1> to vector<4x256xi1>
    %92 = vector.broadcast %cst_39 : f32 to vector<4x256xf32>
    %93 = arith.select %91, %89, %92 : vector<4x256xi1>, vector<4x256xf32>
    %c7 = arith.constant 7 : index
    %c0_40 = arith.constant 0 : index
    %c0_41 = arith.constant 0 : index
    %94 = vector.load %arg2[%c7, %c0_40, %c0_41] : memref<9x8x4xf32, #tpu.memory_space<vmem>>, vector<1x8x4xf32>
    %95 = vector.shape_cast %94 : vector<1x8x4xf32> to vector<8x4xf32>
    %cst_42 = arith.constant dense<0.000000e+00> : vector<8x256xf32>
    %96 = tpu.matmul %95, %93, %cst_42 {dimension_numbers = #tpu.dot_dimension_numbers<[1], [0], [0], [1], [0, 0, 1, 1], [], []>} : vector<8x4xf32>, vector<4x256xf32>, vector<8x256xf32> -> vector<8x256xf32>
    %97 = arith.addf %88, %96 : vector<8x256xf32>
    %c239_i32 = arith.constant 239 : i32
    %98 = tpu.dynamic_rotate %26 by %c239_i32 dim 1 : vector<4x256xf32>, i32 -> vector<4x256xf32>
    %99 = arith.andi %20, %24 : vector<1x256xi1>
    %cst_43 = arith.constant 0.000000e+00 : f32
    %100 = vector.shape_cast %99 : vector<1x256xi1> to vector<1x256xi1>
    %101 = vector.broadcast %100 : vector<1x256xi1> to vector<4x256xi1>
    %102 = vector.broadcast %cst_43 : f32 to vector<4x256xf32>
    %103 = arith.select %101, %98, %102 : vector<4x256xi1>, vector<4x256xf32>
    %c8 = arith.constant 8 : index
    %c0_44 = arith.constant 0 : index
    %c0_45 = arith.constant 0 : index
    %104 = vector.load %arg2[%c8, %c0_44, %c0_45] : memref<9x8x4xf32, #tpu.memory_space<vmem>>, vector<1x8x4xf32>
    %105 = vector.shape_cast %104 : vector<1x8x4xf32> to vector<8x4xf32>
    %cst_46 = arith.constant dense<0.000000e+00> : vector<8x256xf32>
    %106 = tpu.matmul %105, %103, %cst_46 {dimension_numbers = #tpu.dot_dimension_numbers<[1], [0], [0], [1], [0, 0, 1, 1], [], []>} : vector<8x4xf32>, vector<4x256xf32>, vector<8x256xf32> -> vector<8x256xf32>
    %107 = arith.addf %97, %106 : vector<8x256xf32>
    %c0_47 = arith.constant 0 : index
    %c0_48 = arith.constant 0 : index
    %108 = vector.load %arg3[%c0_47, %c0_48] : memref<8x1xf32, #tpu.memory_space<vmem>>, vector<8x1xf32>
    %109 = vector.broadcast %108 : vector<8x1xf32> to vector<8x256xf32>
    %110 = arith.addf %107, %109 : vector<8x256xf32>
    %cst_49 = arith.constant 0.000000e+00 : f32
    %111 = vector.broadcast %cst_49 : f32 to vector<8x256xf32>
    %112 = arith.maximumf %110, %111 : vector<8x256xf32>
    %cst_50 = arith.constant 0.000000e+00 : f32
    %113 = vector.broadcast %cst_50 : f32 to vector<8x256xf32>
    %c17_i32_51 = arith.constant 17 : i32
    %114 = tpu.dynamic_rotate %112 by %c17_i32_51 dim 1 : vector<8x256xf32>, i32 -> vector<8x256xf32>
    %115 = arith.andi %18, %22 : vector<1x256xi1>
    %cst_52 = arith.constant 0.000000e+00 : f32
    %116 = vector.shape_cast %115 : vector<1x256xi1> to vector<1x256xi1>
    %117 = vector.broadcast %116 : vector<1x256xi1> to vector<8x256xi1>
    %118 = vector.broadcast %cst_52 : f32 to vector<8x256xf32>
    %119 = arith.select %117, %114, %118 : vector<8x256xi1>, vector<8x256xf32>
    %c0_53 = arith.constant 0 : index
    %c0_54 = arith.constant 0 : index
    %c0_55 = arith.constant 0 : index
    %120 = vector.load %arg4[%c0_53, %c0_54, %c0_55] : memref<9x8x8xf32, #tpu.memory_space<vmem>>, vector<1x8x8xf32>
    %121 = vector.shape_cast %120 : vector<1x8x8xf32> to vector<8x8xf32>
    %cst_56 = arith.constant dense<0.000000e+00> : vector<8x256xf32>
    %122 = tpu.matmul %121, %119, %cst_56 {dimension_numbers = #tpu.dot_dimension_numbers<[1], [0], [0], [1], [0, 0, 1, 1], [], []>} : vector<8x8xf32>, vector<8x256xf32>, vector<8x256xf32> -> vector<8x256xf32>
    %123 = arith.addf %113, %122 : vector<8x256xf32>
    %c16_i32_57 = arith.constant 16 : i32
    %124 = tpu.dynamic_rotate %112 by %c16_i32_57 dim 1 : vector<8x256xf32>, i32 -> vector<8x256xf32>
    %cst_58 = arith.constant 0.000000e+00 : f32
    %125 = vector.shape_cast %18 : vector<1x256xi1> to vector<1x256xi1>
    %126 = vector.broadcast %125 : vector<1x256xi1> to vector<8x256xi1>
    %127 = vector.broadcast %cst_58 : f32 to vector<8x256xf32>
    %128 = arith.select %126, %124, %127 : vector<8x256xi1>, vector<8x256xf32>
    %c1_59 = arith.constant 1 : index
    %c0_60 = arith.constant 0 : index
    %c0_61 = arith.constant 0 : index
    %129 = vector.load %arg4[%c1_59, %c0_60, %c0_61] : memref<9x8x8xf32, #tpu.memory_space<vmem>>, vector<1x8x8xf32>
    %130 = vector.shape_cast %129 : vector<1x8x8xf32> to vector<8x8xf32>
    %cst_62 = arith.constant dense<0.000000e+00> : vector<8x256xf32>
    %131 = tpu.matmul %130, %128, %cst_62 {dimension_numbers = #tpu.dot_dimension_numbers<[1], [0], [0], [1], [0, 0, 1, 1], [], []>} : vector<8x8xf32>, vector<8x256xf32>, vector<8x256xf32> -> vector<8x256xf32>
    %132 = arith.addf %123, %131 : vector<8x256xf32>
    %c15_i32_63 = arith.constant 15 : i32
    %133 = tpu.dynamic_rotate %112 by %c15_i32_63 dim 1 : vector<8x256xf32>, i32 -> vector<8x256xf32>
    %134 = arith.andi %18, %24 : vector<1x256xi1>
    %cst_64 = arith.constant 0.000000e+00 : f32
    %135 = vector.shape_cast %134 : vector<1x256xi1> to vector<1x256xi1>
    %136 = vector.broadcast %135 : vector<1x256xi1> to vector<8x256xi1>
    %137 = vector.broadcast %cst_64 : f32 to vector<8x256xf32>
    %138 = arith.select %136, %133, %137 : vector<8x256xi1>, vector<8x256xf32>
    %c2_65 = arith.constant 2 : index
    %c0_66 = arith.constant 0 : index
    %c0_67 = arith.constant 0 : index
    %139 = vector.load %arg4[%c2_65, %c0_66, %c0_67] : memref<9x8x8xf32, #tpu.memory_space<vmem>>, vector<1x8x8xf32>
    %140 = vector.shape_cast %139 : vector<1x8x8xf32> to vector<8x8xf32>
    %cst_68 = arith.constant dense<0.000000e+00> : vector<8x256xf32>
    %141 = tpu.matmul %140, %138, %cst_68 {dimension_numbers = #tpu.dot_dimension_numbers<[1], [0], [0], [1], [0, 0, 1, 1], [], []>} : vector<8x8xf32>, vector<8x256xf32>, vector<8x256xf32> -> vector<8x256xf32>
    %142 = arith.addf %132, %141 : vector<8x256xf32>
    %c1_i32_69 = arith.constant 1 : i32
    %143 = tpu.dynamic_rotate %112 by %c1_i32_69 dim 1 : vector<8x256xf32>, i32 -> vector<8x256xf32>
    %cst_70 = arith.constant 0.000000e+00 : f32
    %144 = vector.shape_cast %22 : vector<1x256xi1> to vector<1x256xi1>
    %145 = vector.broadcast %144 : vector<1x256xi1> to vector<8x256xi1>
    %146 = vector.broadcast %cst_70 : f32 to vector<8x256xf32>
    %147 = arith.select %145, %143, %146 : vector<8x256xi1>, vector<8x256xf32>
    %c3_71 = arith.constant 3 : index
    %c0_72 = arith.constant 0 : index
    %c0_73 = arith.constant 0 : index
    %148 = vector.load %arg4[%c3_71, %c0_72, %c0_73] : memref<9x8x8xf32, #tpu.memory_space<vmem>>, vector<1x8x8xf32>
    %149 = vector.shape_cast %148 : vector<1x8x8xf32> to vector<8x8xf32>
    %cst_74 = arith.constant dense<0.000000e+00> : vector<8x256xf32>
    %150 = tpu.matmul %149, %147, %cst_74 {dimension_numbers = #tpu.dot_dimension_numbers<[1], [0], [0], [1], [0, 0, 1, 1], [], []>} : vector<8x8xf32>, vector<8x256xf32>, vector<8x256xf32> -> vector<8x256xf32>
    %151 = arith.addf %142, %150 : vector<8x256xf32>
    %c4_75 = arith.constant 4 : index
    %c0_76 = arith.constant 0 : index
    %c0_77 = arith.constant 0 : index
    %152 = vector.load %arg4[%c4_75, %c0_76, %c0_77] : memref<9x8x8xf32, #tpu.memory_space<vmem>>, vector<1x8x8xf32>
    %153 = vector.shape_cast %152 : vector<1x8x8xf32> to vector<8x8xf32>
    %cst_78 = arith.constant dense<0.000000e+00> : vector<8x256xf32>
    %154 = tpu.matmul %153, %112, %cst_78 {dimension_numbers = #tpu.dot_dimension_numbers<[1], [0], [0], [1], [0, 0, 1, 1], [], []>} : vector<8x8xf32>, vector<8x256xf32>, vector<8x256xf32> -> vector<8x256xf32>
    %155 = arith.addf %151, %154 : vector<8x256xf32>
    %c255_i32_79 = arith.constant 255 : i32
    %156 = tpu.dynamic_rotate %112 by %c255_i32_79 dim 1 : vector<8x256xf32>, i32 -> vector<8x256xf32>
    %cst_80 = arith.constant 0.000000e+00 : f32
    %157 = vector.shape_cast %24 : vector<1x256xi1> to vector<1x256xi1>
    %158 = vector.broadcast %157 : vector<1x256xi1> to vector<8x256xi1>
    %159 = vector.broadcast %cst_80 : f32 to vector<8x256xf32>
    %160 = arith.select %158, %156, %159 : vector<8x256xi1>, vector<8x256xf32>
    %c5_81 = arith.constant 5 : index
    %c0_82 = arith.constant 0 : index
    %c0_83 = arith.constant 0 : index
    %161 = vector.load %arg4[%c5_81, %c0_82, %c0_83] : memref<9x8x8xf32, #tpu.memory_space<vmem>>, vector<1x8x8xf32>
    %162 = vector.shape_cast %161 : vector<1x8x8xf32> to vector<8x8xf32>
    %cst_84 = arith.constant dense<0.000000e+00> : vector<8x256xf32>
    %163 = tpu.matmul %162, %160, %cst_84 {dimension_numbers = #tpu.dot_dimension_numbers<[1], [0], [0], [1], [0, 0, 1, 1], [], []>} : vector<8x8xf32>, vector<8x256xf32>, vector<8x256xf32> -> vector<8x256xf32>
    %164 = arith.addf %155, %163 : vector<8x256xf32>
    %c241_i32_85 = arith.constant 241 : i32
    %165 = tpu.dynamic_rotate %112 by %c241_i32_85 dim 1 : vector<8x256xf32>, i32 -> vector<8x256xf32>
    %166 = arith.andi %20, %22 : vector<1x256xi1>
    %cst_86 = arith.constant 0.000000e+00 : f32
    %167 = vector.shape_cast %166 : vector<1x256xi1> to vector<1x256xi1>
    %168 = vector.broadcast %167 : vector<1x256xi1> to vector<8x256xi1>
    %169 = vector.broadcast %cst_86 : f32 to vector<8x256xf32>
    %170 = arith.select %168, %165, %169 : vector<8x256xi1>, vector<8x256xf32>
    %c6_87 = arith.constant 6 : index
    %c0_88 = arith.constant 0 : index
    %c0_89 = arith.constant 0 : index
    %171 = vector.load %arg4[%c6_87, %c0_88, %c0_89] : memref<9x8x8xf32, #tpu.memory_space<vmem>>, vector<1x8x8xf32>
    %172 = vector.shape_cast %171 : vector<1x8x8xf32> to vector<8x8xf32>
    %cst_90 = arith.constant dense<0.000000e+00> : vector<8x256xf32>
    %173 = tpu.matmul %172, %170, %cst_90 {dimension_numbers = #tpu.dot_dimension_numbers<[1], [0], [0], [1], [0, 0, 1, 1], [], []>} : vector<8x8xf32>, vector<8x256xf32>, vector<8x256xf32> -> vector<8x256xf32>
    %174 = arith.addf %164, %173 : vector<8x256xf32>
    %c240_i32_91 = arith.constant 240 : i32
    %175 = tpu.dynamic_rotate %112 by %c240_i32_91 dim 1 : vector<8x256xf32>, i32 -> vector<8x256xf32>
    %cst_92 = arith.constant 0.000000e+00 : f32
    %176 = vector.shape_cast %20 : vector<1x256xi1> to vector<1x256xi1>
    %177 = vector.broadcast %176 : vector<1x256xi1> to vector<8x256xi1>
    %178 = vector.broadcast %cst_92 : f32 to vector<8x256xf32>
    %179 = arith.select %177, %175, %178 : vector<8x256xi1>, vector<8x256xf32>
    %c7_93 = arith.constant 7 : index
    %c0_94 = arith.constant 0 : index
    %c0_95 = arith.constant 0 : index
    %180 = vector.load %arg4[%c7_93, %c0_94, %c0_95] : memref<9x8x8xf32, #tpu.memory_space<vmem>>, vector<1x8x8xf32>
    %181 = vector.shape_cast %180 : vector<1x8x8xf32> to vector<8x8xf32>
    %cst_96 = arith.constant dense<0.000000e+00> : vector<8x256xf32>
    %182 = tpu.matmul %181, %179, %cst_96 {dimension_numbers = #tpu.dot_dimension_numbers<[1], [0], [0], [1], [0, 0, 1, 1], [], []>} : vector<8x8xf32>, vector<8x256xf32>, vector<8x256xf32> -> vector<8x256xf32>
    %183 = arith.addf %174, %182 : vector<8x256xf32>
    %c239_i32_97 = arith.constant 239 : i32
    %184 = tpu.dynamic_rotate %112 by %c239_i32_97 dim 1 : vector<8x256xf32>, i32 -> vector<8x256xf32>
    %185 = arith.andi %20, %24 : vector<1x256xi1>
    %cst_98 = arith.constant 0.000000e+00 : f32
    %186 = vector.shape_cast %185 : vector<1x256xi1> to vector<1x256xi1>
    %187 = vector.broadcast %186 : vector<1x256xi1> to vector<8x256xi1>
    %188 = vector.broadcast %cst_98 : f32 to vector<8x256xf32>
    %189 = arith.select %187, %184, %188 : vector<8x256xi1>, vector<8x256xf32>
    %c8_99 = arith.constant 8 : index
    %c0_100 = arith.constant 0 : index
    %c0_101 = arith.constant 0 : index
    %190 = vector.load %arg4[%c8_99, %c0_100, %c0_101] : memref<9x8x8xf32, #tpu.memory_space<vmem>>, vector<1x8x8xf32>
    %191 = vector.shape_cast %190 : vector<1x8x8xf32> to vector<8x8xf32>
    %cst_102 = arith.constant dense<0.000000e+00> : vector<8x256xf32>
    %192 = tpu.matmul %191, %189, %cst_102 {dimension_numbers = #tpu.dot_dimension_numbers<[1], [0], [0], [1], [0, 0, 1, 1], [], []>} : vector<8x8xf32>, vector<8x256xf32>, vector<8x256xf32> -> vector<8x256xf32>
    %193 = arith.addf %183, %192 : vector<8x256xf32>
    %c0_103 = arith.constant 0 : index
    %c0_104 = arith.constant 0 : index
    %194 = vector.load %arg5[%c0_103, %c0_104] : memref<8x1xf32, #tpu.memory_space<vmem>>, vector<8x1xf32>
    %195 = vector.broadcast %194 : vector<8x1xf32> to vector<8x256xf32>
    %196 = arith.addf %193, %195 : vector<8x256xf32>
    %cst_105 = arith.constant 0.000000e+00 : f32
    %197 = vector.broadcast %cst_105 : f32 to vector<8x256xf32>
    %198 = arith.maximumf %196, %197 : vector<8x256xf32>
    %cst_106 = arith.constant 0.000000e+00 : f32
    %199 = vector.broadcast %cst_106 : f32 to vector<4x256xf32>
    %c17_i32_107 = arith.constant 17 : i32
    %200 = tpu.dynamic_rotate %198 by %c17_i32_107 dim 1 : vector<8x256xf32>, i32 -> vector<8x256xf32>
    %201 = arith.andi %18, %22 : vector<1x256xi1>
    %cst_108 = arith.constant 0.000000e+00 : f32
    %202 = vector.shape_cast %201 : vector<1x256xi1> to vector<1x256xi1>
    %203 = vector.broadcast %202 : vector<1x256xi1> to vector<8x256xi1>
    %204 = vector.broadcast %cst_108 : f32 to vector<8x256xf32>
    %205 = arith.select %203, %200, %204 : vector<8x256xi1>, vector<8x256xf32>
    %c0_109 = arith.constant 0 : index
    %c0_110 = arith.constant 0 : index
    %c0_111 = arith.constant 0 : index
    %206 = vector.load %arg6[%c0_109, %c0_110, %c0_111] : memref<9x4x8xf32, #tpu.memory_space<vmem>>, vector<1x4x8xf32>
    %207 = vector.shape_cast %206 : vector<1x4x8xf32> to vector<4x8xf32>
    %cst_112 = arith.constant dense<0.000000e+00> : vector<4x256xf32>
    %208 = tpu.matmul %207, %205, %cst_112 {dimension_numbers = #tpu.dot_dimension_numbers<[1], [0], [0], [1], [0, 0, 1, 1], [], []>} : vector<4x8xf32>, vector<8x256xf32>, vector<4x256xf32> -> vector<4x256xf32>
    %209 = arith.addf %199, %208 : vector<4x256xf32>
    %c16_i32_113 = arith.constant 16 : i32
    %210 = tpu.dynamic_rotate %198 by %c16_i32_113 dim 1 : vector<8x256xf32>, i32 -> vector<8x256xf32>
    %cst_114 = arith.constant 0.000000e+00 : f32
    %211 = vector.shape_cast %18 : vector<1x256xi1> to vector<1x256xi1>
    %212 = vector.broadcast %211 : vector<1x256xi1> to vector<8x256xi1>
    %213 = vector.broadcast %cst_114 : f32 to vector<8x256xf32>
    %214 = arith.select %212, %210, %213 : vector<8x256xi1>, vector<8x256xf32>
    %c1_115 = arith.constant 1 : index
    %c0_116 = arith.constant 0 : index
    %c0_117 = arith.constant 0 : index
    %215 = vector.load %arg6[%c1_115, %c0_116, %c0_117] : memref<9x4x8xf32, #tpu.memory_space<vmem>>, vector<1x4x8xf32>
    %216 = vector.shape_cast %215 : vector<1x4x8xf32> to vector<4x8xf32>
    %cst_118 = arith.constant dense<0.000000e+00> : vector<4x256xf32>
    %217 = tpu.matmul %216, %214, %cst_118 {dimension_numbers = #tpu.dot_dimension_numbers<[1], [0], [0], [1], [0, 0, 1, 1], [], []>} : vector<4x8xf32>, vector<8x256xf32>, vector<4x256xf32> -> vector<4x256xf32>
    %218 = arith.addf %209, %217 : vector<4x256xf32>
    %c15_i32_119 = arith.constant 15 : i32
    %219 = tpu.dynamic_rotate %198 by %c15_i32_119 dim 1 : vector<8x256xf32>, i32 -> vector<8x256xf32>
    %220 = arith.andi %18, %24 : vector<1x256xi1>
    %cst_120 = arith.constant 0.000000e+00 : f32
    %221 = vector.shape_cast %220 : vector<1x256xi1> to vector<1x256xi1>
    %222 = vector.broadcast %221 : vector<1x256xi1> to vector<8x256xi1>
    %223 = vector.broadcast %cst_120 : f32 to vector<8x256xf32>
    %224 = arith.select %222, %219, %223 : vector<8x256xi1>, vector<8x256xf32>
    %c2_121 = arith.constant 2 : index
    %c0_122 = arith.constant 0 : index
    %c0_123 = arith.constant 0 : index
    %225 = vector.load %arg6[%c2_121, %c0_122, %c0_123] : memref<9x4x8xf32, #tpu.memory_space<vmem>>, vector<1x4x8xf32>
    %226 = vector.shape_cast %225 : vector<1x4x8xf32> to vector<4x8xf32>
    %cst_124 = arith.constant dense<0.000000e+00> : vector<4x256xf32>
    %227 = tpu.matmul %226, %224, %cst_124 {dimension_numbers = #tpu.dot_dimension_numbers<[1], [0], [0], [1], [0, 0, 1, 1], [], []>} : vector<4x8xf32>, vector<8x256xf32>, vector<4x256xf32> -> vector<4x256xf32>
    %228 = arith.addf %218, %227 : vector<4x256xf32>
    %c1_i32_125 = arith.constant 1 : i32
    %229 = tpu.dynamic_rotate %198 by %c1_i32_125 dim 1 : vector<8x256xf32>, i32 -> vector<8x256xf32>
    %cst_126 = arith.constant 0.000000e+00 : f32
    %230 = vector.shape_cast %22 : vector<1x256xi1> to vector<1x256xi1>
    %231 = vector.broadcast %230 : vector<1x256xi1> to vector<8x256xi1>
    %232 = vector.broadcast %cst_126 : f32 to vector<8x256xf32>
    %233 = arith.select %231, %229, %232 : vector<8x256xi1>, vector<8x256xf32>
    %c3_127 = arith.constant 3 : index
    %c0_128 = arith.constant 0 : index
    %c0_129 = arith.constant 0 : index
    %234 = vector.load %arg6[%c3_127, %c0_128, %c0_129] : memref<9x4x8xf32, #tpu.memory_space<vmem>>, vector<1x4x8xf32>
    %235 = vector.shape_cast %234 : vector<1x4x8xf32> to vector<4x8xf32>
    %cst_130 = arith.constant dense<0.000000e+00> : vector<4x256xf32>
    %236 = tpu.matmul %235, %233, %cst_130 {dimension_numbers = #tpu.dot_dimension_numbers<[1], [0], [0], [1], [0, 0, 1, 1], [], []>} : vector<4x8xf32>, vector<8x256xf32>, vector<4x256xf32> -> vector<4x256xf32>
    %237 = arith.addf %228, %236 : vector<4x256xf32>
    %c4_131 = arith.constant 4 : index
    %c0_132 = arith.constant 0 : index
    %c0_133 = arith.constant 0 : index
    %238 = vector.load %arg6[%c4_131, %c0_132, %c0_133] : memref<9x4x8xf32, #tpu.memory_space<vmem>>, vector<1x4x8xf32>
    %239 = vector.shape_cast %238 : vector<1x4x8xf32> to vector<4x8xf32>
    %cst_134 = arith.constant dense<0.000000e+00> : vector<4x256xf32>
    %240 = tpu.matmul %239, %198, %cst_134 {dimension_numbers = #tpu.dot_dimension_numbers<[1], [0], [0], [1], [0, 0, 1, 1], [], []>} : vector<4x8xf32>, vector<8x256xf32>, vector<4x256xf32> -> vector<4x256xf32>
    %241 = arith.addf %237, %240 : vector<4x256xf32>
    %c255_i32_135 = arith.constant 255 : i32
    %242 = tpu.dynamic_rotate %198 by %c255_i32_135 dim 1 : vector<8x256xf32>, i32 -> vector<8x256xf32>
    %cst_136 = arith.constant 0.000000e+00 : f32
    %243 = vector.shape_cast %24 : vector<1x256xi1> to vector<1x256xi1>
    %244 = vector.broadcast %243 : vector<1x256xi1> to vector<8x256xi1>
    %245 = vector.broadcast %cst_136 : f32 to vector<8x256xf32>
    %246 = arith.select %244, %242, %245 : vector<8x256xi1>, vector<8x256xf32>
    %c5_137 = arith.constant 5 : index
    %c0_138 = arith.constant 0 : index
    %c0_139 = arith.constant 0 : index
    %247 = vector.load %arg6[%c5_137, %c0_138, %c0_139] : memref<9x4x8xf32, #tpu.memory_space<vmem>>, vector<1x4x8xf32>
    %248 = vector.shape_cast %247 : vector<1x4x8xf32> to vector<4x8xf32>
    %cst_140 = arith.constant dense<0.000000e+00> : vector<4x256xf32>
    %249 = tpu.matmul %248, %246, %cst_140 {dimension_numbers = #tpu.dot_dimension_numbers<[1], [0], [0], [1], [0, 0, 1, 1], [], []>} : vector<4x8xf32>, vector<8x256xf32>, vector<4x256xf32> -> vector<4x256xf32>
    %250 = arith.addf %241, %249 : vector<4x256xf32>
    %c241_i32_141 = arith.constant 241 : i32
    %251 = tpu.dynamic_rotate %198 by %c241_i32_141 dim 1 : vector<8x256xf32>, i32 -> vector<8x256xf32>
    %252 = arith.andi %20, %22 : vector<1x256xi1>
    %cst_142 = arith.constant 0.000000e+00 : f32
    %253 = vector.shape_cast %252 : vector<1x256xi1> to vector<1x256xi1>
    %254 = vector.broadcast %253 : vector<1x256xi1> to vector<8x256xi1>
    %255 = vector.broadcast %cst_142 : f32 to vector<8x256xf32>
    %256 = arith.select %254, %251, %255 : vector<8x256xi1>, vector<8x256xf32>
    %c6_143 = arith.constant 6 : index
    %c0_144 = arith.constant 0 : index
    %c0_145 = arith.constant 0 : index
    %257 = vector.load %arg6[%c6_143, %c0_144, %c0_145] : memref<9x4x8xf32, #tpu.memory_space<vmem>>, vector<1x4x8xf32>
    %258 = vector.shape_cast %257 : vector<1x4x8xf32> to vector<4x8xf32>
    %cst_146 = arith.constant dense<0.000000e+00> : vector<4x256xf32>
    %259 = tpu.matmul %258, %256, %cst_146 {dimension_numbers = #tpu.dot_dimension_numbers<[1], [0], [0], [1], [0, 0, 1, 1], [], []>} : vector<4x8xf32>, vector<8x256xf32>, vector<4x256xf32> -> vector<4x256xf32>
    %260 = arith.addf %250, %259 : vector<4x256xf32>
    %c240_i32_147 = arith.constant 240 : i32
    %261 = tpu.dynamic_rotate %198 by %c240_i32_147 dim 1 : vector<8x256xf32>, i32 -> vector<8x256xf32>
    %cst_148 = arith.constant 0.000000e+00 : f32
    %262 = vector.shape_cast %20 : vector<1x256xi1> to vector<1x256xi1>
    %263 = vector.broadcast %262 : vector<1x256xi1> to vector<8x256xi1>
    %264 = vector.broadcast %cst_148 : f32 to vector<8x256xf32>
    %265 = arith.select %263, %261, %264 : vector<8x256xi1>, vector<8x256xf32>
    %c7_149 = arith.constant 7 : index
    %c0_150 = arith.constant 0 : index
    %c0_151 = arith.constant 0 : index
    %266 = vector.load %arg6[%c7_149, %c0_150, %c0_151] : memref<9x4x8xf32, #tpu.memory_space<vmem>>, vector<1x4x8xf32>
    %267 = vector.shape_cast %266 : vector<1x4x8xf32> to vector<4x8xf32>
    %cst_152 = arith.constant dense<0.000000e+00> : vector<4x256xf32>
    %268 = tpu.matmul %267, %265, %cst_152 {dimension_numbers = #tpu.dot_dimension_numbers<[1], [0], [0], [1], [0, 0, 1, 1], [], []>} : vector<4x8xf32>, vector<8x256xf32>, vector<4x256xf32> -> vector<4x256xf32>
    %269 = arith.addf %260, %268 : vector<4x256xf32>
    %c239_i32_153 = arith.constant 239 : i32
    %270 = tpu.dynamic_rotate %198 by %c239_i32_153 dim 1 : vector<8x256xf32>, i32 -> vector<8x256xf32>
    %271 = arith.andi %20, %24 : vector<1x256xi1>
    %cst_154 = arith.constant 0.000000e+00 : f32
    %272 = vector.shape_cast %271 : vector<1x256xi1> to vector<1x256xi1>
    %273 = vector.broadcast %272 : vector<1x256xi1> to vector<8x256xi1>
    %274 = vector.broadcast %cst_154 : f32 to vector<8x256xf32>
    %275 = arith.select %273, %270, %274 : vector<8x256xi1>, vector<8x256xf32>
    %c8_155 = arith.constant 8 : index
    %c0_156 = arith.constant 0 : index
    %c0_157 = arith.constant 0 : index
    %276 = vector.load %arg6[%c8_155, %c0_156, %c0_157] : memref<9x4x8xf32, #tpu.memory_space<vmem>>, vector<1x4x8xf32>
    %277 = vector.shape_cast %276 : vector<1x4x8xf32> to vector<4x8xf32>
    %cst_158 = arith.constant dense<0.000000e+00> : vector<4x256xf32>
    %278 = tpu.matmul %277, %275, %cst_158 {dimension_numbers = #tpu.dot_dimension_numbers<[1], [0], [0], [1], [0, 0, 1, 1], [], []>} : vector<4x8xf32>, vector<8x256xf32>, vector<4x256xf32> -> vector<4x256xf32>
    %279 = arith.addf %269, %278 : vector<4x256xf32>
    %c0_159 = arith.constant 0 : index
    %c0_160 = arith.constant 0 : index
    %280 = vector.load %arg7[%c0_159, %c0_160] : memref<4x1xf32, #tpu.memory_space<vmem>>, vector<4x1xf32>
    %281 = vector.broadcast %280 : vector<4x1xf32> to vector<4x256xf32>
    %282 = arith.addf %279, %281 : vector<4x256xf32>
    %cst_161 = arith.constant 0.000000e+00 : f32
    %283 = vector.broadcast %cst_161 : f32 to vector<4x256xf32>
    %284 = arith.maximumf %282, %283 : vector<4x256xf32>
    %285 = arith.addf %26, %284 : vector<4x256xf32>
    %cst_162 = arith.constant 0.000000e+00 : f32
    %286 = vector.broadcast %cst_162 : f32 to vector<4x256xf32>
    %c17_i32_163 = arith.constant 17 : i32
    %287 = tpu.dynamic_rotate %285 by %c17_i32_163 dim 1 : vector<4x256xf32>, i32 -> vector<4x256xf32>
    %288 = arith.andi %18, %22 : vector<1x256xi1>
    %cst_164 = arith.constant 0.000000e+00 : f32
    %289 = vector.shape_cast %288 : vector<1x256xi1> to vector<1x256xi1>
    %290 = vector.broadcast %289 : vector<1x256xi1> to vector<4x256xi1>
    %291 = vector.broadcast %cst_164 : f32 to vector<4x256xf32>
    %292 = arith.select %290, %287, %291 : vector<4x256xi1>, vector<4x256xf32>
    %c0_165 = arith.constant 0 : index
    %c0_166 = arith.constant 0 : index
    %c0_167 = arith.constant 0 : index
    %293 = vector.load %arg8[%c0_165, %c0_166, %c0_167] : memref<9x4x4xf32, #tpu.memory_space<vmem>>, vector<1x4x4xf32>
    %294 = vector.shape_cast %293 : vector<1x4x4xf32> to vector<4x4xf32>
    %cst_168 = arith.constant dense<0.000000e+00> : vector<4x256xf32>
    %295 = tpu.matmul %294, %292, %cst_168 {dimension_numbers = #tpu.dot_dimension_numbers<[1], [0], [0], [1], [0, 0, 1, 1], [], []>} : vector<4x4xf32>, vector<4x256xf32>, vector<4x256xf32> -> vector<4x256xf32>
    %296 = arith.addf %286, %295 : vector<4x256xf32>
    %c16_i32_169 = arith.constant 16 : i32
    %297 = tpu.dynamic_rotate %285 by %c16_i32_169 dim 1 : vector<4x256xf32>, i32 -> vector<4x256xf32>
    %cst_170 = arith.constant 0.000000e+00 : f32
    %298 = vector.shape_cast %18 : vector<1x256xi1> to vector<1x256xi1>
    %299 = vector.broadcast %298 : vector<1x256xi1> to vector<4x256xi1>
    %300 = vector.broadcast %cst_170 : f32 to vector<4x256xf32>
    %301 = arith.select %299, %297, %300 : vector<4x256xi1>, vector<4x256xf32>
    %c1_171 = arith.constant 1 : index
    %c0_172 = arith.constant 0 : index
    %c0_173 = arith.constant 0 : index
    %302 = vector.load %arg8[%c1_171, %c0_172, %c0_173] : memref<9x4x4xf32, #tpu.memory_space<vmem>>, vector<1x4x4xf32>
    %303 = vector.shape_cast %302 : vector<1x4x4xf32> to vector<4x4xf32>
    %cst_174 = arith.constant dense<0.000000e+00> : vector<4x256xf32>
    %304 = tpu.matmul %303, %301, %cst_174 {dimension_numbers = #tpu.dot_dimension_numbers<[1], [0], [0], [1], [0, 0, 1, 1], [], []>} : vector<4x4xf32>, vector<4x256xf32>, vector<4x256xf32> -> vector<4x256xf32>
    %305 = arith.addf %296, %304 : vector<4x256xf32>
    %c15_i32_175 = arith.constant 15 : i32
    %306 = tpu.dynamic_rotate %285 by %c15_i32_175 dim 1 : vector<4x256xf32>, i32 -> vector<4x256xf32>
    %307 = arith.andi %18, %24 : vector<1x256xi1>
    %cst_176 = arith.constant 0.000000e+00 : f32
    %308 = vector.shape_cast %307 : vector<1x256xi1> to vector<1x256xi1>
    %309 = vector.broadcast %308 : vector<1x256xi1> to vector<4x256xi1>
    %310 = vector.broadcast %cst_176 : f32 to vector<4x256xf32>
    %311 = arith.select %309, %306, %310 : vector<4x256xi1>, vector<4x256xf32>
    %c2_177 = arith.constant 2 : index
    %c0_178 = arith.constant 0 : index
    %c0_179 = arith.constant 0 : index
    %312 = vector.load %arg8[%c2_177, %c0_178, %c0_179] : memref<9x4x4xf32, #tpu.memory_space<vmem>>, vector<1x4x4xf32>
    %313 = vector.shape_cast %312 : vector<1x4x4xf32> to vector<4x4xf32>
    %cst_180 = arith.constant dense<0.000000e+00> : vector<4x256xf32>
    %314 = tpu.matmul %313, %311, %cst_180 {dimension_numbers = #tpu.dot_dimension_numbers<[1], [0], [0], [1], [0, 0, 1, 1], [], []>} : vector<4x4xf32>, vector<4x256xf32>, vector<4x256xf32> -> vector<4x256xf32>
    %315 = arith.addf %305, %314 : vector<4x256xf32>
    %c1_i32_181 = arith.constant 1 : i32
    %316 = tpu.dynamic_rotate %285 by %c1_i32_181 dim 1 : vector<4x256xf32>, i32 -> vector<4x256xf32>
    %cst_182 = arith.constant 0.000000e+00 : f32
    %317 = vector.shape_cast %22 : vector<1x256xi1> to vector<1x256xi1>
    %318 = vector.broadcast %317 : vector<1x256xi1> to vector<4x256xi1>
    %319 = vector.broadcast %cst_182 : f32 to vector<4x256xf32>
    %320 = arith.select %318, %316, %319 : vector<4x256xi1>, vector<4x256xf32>
    %c3_183 = arith.constant 3 : index
    %c0_184 = arith.constant 0 : index
    %c0_185 = arith.constant 0 : index
    %321 = vector.load %arg8[%c3_183, %c0_184, %c0_185] : memref<9x4x4xf32, #tpu.memory_space<vmem>>, vector<1x4x4xf32>
    %322 = vector.shape_cast %321 : vector<1x4x4xf32> to vector<4x4xf32>
    %cst_186 = arith.constant dense<0.000000e+00> : vector<4x256xf32>
    %323 = tpu.matmul %322, %320, %cst_186 {dimension_numbers = #tpu.dot_dimension_numbers<[1], [0], [0], [1], [0, 0, 1, 1], [], []>} : vector<4x4xf32>, vector<4x256xf32>, vector<4x256xf32> -> vector<4x256xf32>
    %324 = arith.addf %315, %323 : vector<4x256xf32>
    %c4_187 = arith.constant 4 : index
    %c0_188 = arith.constant 0 : index
    %c0_189 = arith.constant 0 : index
    %325 = vector.load %arg8[%c4_187, %c0_188, %c0_189] : memref<9x4x4xf32, #tpu.memory_space<vmem>>, vector<1x4x4xf32>
    %326 = vector.shape_cast %325 : vector<1x4x4xf32> to vector<4x4xf32>
    %cst_190 = arith.constant dense<0.000000e+00> : vector<4x256xf32>
    %327 = tpu.matmul %326, %285, %cst_190 {dimension_numbers = #tpu.dot_dimension_numbers<[1], [0], [0], [1], [0, 0, 1, 1], [], []>} : vector<4x4xf32>, vector<4x256xf32>, vector<4x256xf32> -> vector<4x256xf32>
    %328 = arith.addf %324, %327 : vector<4x256xf32>
    %c255_i32_191 = arith.constant 255 : i32
    %329 = tpu.dynamic_rotate %285 by %c255_i32_191 dim 1 : vector<4x256xf32>, i32 -> vector<4x256xf32>
    %cst_192 = arith.constant 0.000000e+00 : f32
    %330 = vector.shape_cast %24 : vector<1x256xi1> to vector<1x256xi1>
    %331 = vector.broadcast %330 : vector<1x256xi1> to vector<4x256xi1>
    %332 = vector.broadcast %cst_192 : f32 to vector<4x256xf32>
    %333 = arith.select %331, %329, %332 : vector<4x256xi1>, vector<4x256xf32>
    %c5_193 = arith.constant 5 : index
    %c0_194 = arith.constant 0 : index
    %c0_195 = arith.constant 0 : index
    %334 = vector.load %arg8[%c5_193, %c0_194, %c0_195] : memref<9x4x4xf32, #tpu.memory_space<vmem>>, vector<1x4x4xf32>
    %335 = vector.shape_cast %334 : vector<1x4x4xf32> to vector<4x4xf32>
    %cst_196 = arith.constant dense<0.000000e+00> : vector<4x256xf32>
    %336 = tpu.matmul %335, %333, %cst_196 {dimension_numbers = #tpu.dot_dimension_numbers<[1], [0], [0], [1], [0, 0, 1, 1], [], []>} : vector<4x4xf32>, vector<4x256xf32>, vector<4x256xf32> -> vector<4x256xf32>
    %337 = arith.addf %328, %336 : vector<4x256xf32>
    %c241_i32_197 = arith.constant 241 : i32
    %338 = tpu.dynamic_rotate %285 by %c241_i32_197 dim 1 : vector<4x256xf32>, i32 -> vector<4x256xf32>
    %339 = arith.andi %20, %22 : vector<1x256xi1>
    %cst_198 = arith.constant 0.000000e+00 : f32
    %340 = vector.shape_cast %339 : vector<1x256xi1> to vector<1x256xi1>
    %341 = vector.broadcast %340 : vector<1x256xi1> to vector<4x256xi1>
    %342 = vector.broadcast %cst_198 : f32 to vector<4x256xf32>
    %343 = arith.select %341, %338, %342 : vector<4x256xi1>, vector<4x256xf32>
    %c6_199 = arith.constant 6 : index
    %c0_200 = arith.constant 0 : index
    %c0_201 = arith.constant 0 : index
    %344 = vector.load %arg8[%c6_199, %c0_200, %c0_201] : memref<9x4x4xf32, #tpu.memory_space<vmem>>, vector<1x4x4xf32>
    %345 = vector.shape_cast %344 : vector<1x4x4xf32> to vector<4x4xf32>
    %cst_202 = arith.constant dense<0.000000e+00> : vector<4x256xf32>
    %346 = tpu.matmul %345, %343, %cst_202 {dimension_numbers = #tpu.dot_dimension_numbers<[1], [0], [0], [1], [0, 0, 1, 1], [], []>} : vector<4x4xf32>, vector<4x256xf32>, vector<4x256xf32> -> vector<4x256xf32>
    %347 = arith.addf %337, %346 : vector<4x256xf32>
    %c240_i32_203 = arith.constant 240 : i32
    %348 = tpu.dynamic_rotate %285 by %c240_i32_203 dim 1 : vector<4x256xf32>, i32 -> vector<4x256xf32>
    %cst_204 = arith.constant 0.000000e+00 : f32
    %349 = vector.shape_cast %20 : vector<1x256xi1> to vector<1x256xi1>
    %350 = vector.broadcast %349 : vector<1x256xi1> to vector<4x256xi1>
    %351 = vector.broadcast %cst_204 : f32 to vector<4x256xf32>
    %352 = arith.select %350, %348, %351 : vector<4x256xi1>, vector<4x256xf32>
    %c7_205 = arith.constant 7 : index
    %c0_206 = arith.constant 0 : index
    %c0_207 = arith.constant 0 : index
    %353 = vector.load %arg8[%c7_205, %c0_206, %c0_207] : memref<9x4x4xf32, #tpu.memory_space<vmem>>, vector<1x4x4xf32>
    %354 = vector.shape_cast %353 : vector<1x4x4xf32> to vector<4x4xf32>
    %cst_208 = arith.constant dense<0.000000e+00> : vector<4x256xf32>
    %355 = tpu.matmul %354, %352, %cst_208 {dimension_numbers = #tpu.dot_dimension_numbers<[1], [0], [0], [1], [0, 0, 1, 1], [], []>} : vector<4x4xf32>, vector<4x256xf32>, vector<4x256xf32> -> vector<4x256xf32>
    %356 = arith.addf %347, %355 : vector<4x256xf32>
    %c239_i32_209 = arith.constant 239 : i32
    %357 = tpu.dynamic_rotate %285 by %c239_i32_209 dim 1 : vector<4x256xf32>, i32 -> vector<4x256xf32>
    %358 = arith.andi %20, %24 : vector<1x256xi1>
    %cst_210 = arith.constant 0.000000e+00 : f32
    %359 = vector.shape_cast %358 : vector<1x256xi1> to vector<1x256xi1>
    %360 = vector.broadcast %359 : vector<1x256xi1> to vector<4x256xi1>
    %361 = vector.broadcast %cst_210 : f32 to vector<4x256xf32>
    %362 = arith.select %360, %357, %361 : vector<4x256xi1>, vector<4x256xf32>
    %c8_211 = arith.constant 8 : index
    %c0_212 = arith.constant 0 : index
    %c0_213 = arith.constant 0 : index
    %363 = vector.load %arg8[%c8_211, %c0_212, %c0_213] : memref<9x4x4xf32, #tpu.memory_space<vmem>>, vector<1x4x4xf32>
    %364 = vector.shape_cast %363 : vector<1x4x4xf32> to vector<4x4xf32>
    %cst_214 = arith.constant dense<0.000000e+00> : vector<4x256xf32>
    %365 = tpu.matmul %364, %362, %cst_214 {dimension_numbers = #tpu.dot_dimension_numbers<[1], [0], [0], [1], [0, 0, 1, 1], [], []>} : vector<4x4xf32>, vector<4x256xf32>, vector<4x256xf32> -> vector<4x256xf32>
    %366 = arith.addf %356, %365 : vector<4x256xf32>
    %c0_215 = arith.constant 0 : index
    %c0_216 = arith.constant 0 : index
    %367 = vector.load %arg9[%c0_215, %c0_216] : memref<4x1xf32, #tpu.memory_space<vmem>>, vector<4x1xf32>
    %368 = vector.broadcast %367 : vector<4x1xf32> to vector<4x256xf32>
    %369 = arith.addf %366, %368 : vector<4x256xf32>
    %cst_217 = arith.constant 0.000000e+00 : f32
    %370 = vector.broadcast %cst_217 : f32 to vector<4x256xf32>
    %371 = arith.maximumf %369, %370 : vector<4x256xf32>
    %c0_218 = arith.constant 0 : index
    %c0_219 = arith.constant 0 : index
    %c0_220 = arith.constant 0 : index
    %372 = vector.load %arg10[%c0_218, %c0_219, %c0_220] : memref<1x4x256xf32, #tpu.memory_space<vmem>>, vector<1x4x256xf32>
    %373 = vector.shape_cast %372 : vector<1x4x256xf32> to vector<4x256xf32>
    %374 = vector.shape_cast %371 : vector<4x256xf32> to vector<1x4x256xf32>
    tpu.vector_store %arg10[%c0_218, %c0_219, %c0_220], %374 {strides = array<i32>} : memref<1x4x256xf32, #tpu.memory_space<vmem>>, vector<1x4x256xf32>,
    return
  }
  func.func @transform_0(%arg0: i32) -> (i32, i32, i32) {
    %c0_i32 = arith.constant 0 : i32
    %c0_i32_0 = arith.constant 0 : i32
    %c0_i32_1 = arith.constant 0 : i32
    return %arg0, %c0_i32, %c0_i32_0 : i32, i32, i32
  }
  func.func @transform_1(%arg0: i32) -> (i32, i32, i32) {
    %c0_i32 = arith.constant 0 : i32
    %c0_i32_0 = arith.constant 0 : i32
    %c0_i32_1 = arith.constant 0 : i32
    %c0_i32_2 = arith.constant 0 : i32
    return %c0_i32, %c0_i32_0, %c0_i32_1 : i32, i32, i32
  }
  func.func @transform_2(%arg0: i32) -> (i32, i32) {
    %c0_i32 = arith.constant 0 : i32
    %c0_i32_0 = arith.constant 0 : i32
    %c0_i32_1 = arith.constant 0 : i32
    return %c0_i32, %c0_i32_0 : i32, i32
  }
  func.func @transform_3(%arg0: i32) -> (i32, i32, i32) {
    %c0_i32 = arith.constant 0 : i32
    %c0_i32_0 = arith.constant 0 : i32
    %c0_i32_1 = arith.constant 0 : i32
    %c0_i32_2 = arith.constant 0 : i32
    return %c0_i32, %c0_i32_0, %c0_i32_1 : i32, i32, i32
  }
  func.func @transform_4(%arg0: i32) -> (i32, i32) {
    %c0_i32 = arith.constant 0 : i32
    %c0_i32_0 = arith.constant 0 : i32
    %c0_i32_1 = arith.constant 0 : i32
    return %c0_i32, %c0_i32_0 : i32, i32
  }
  func.func @transform_5(%arg0: i32) -> (i32, i32, i32) {
    %c0_i32 = arith.constant 0 : i32
    %c0_i32_0 = arith.constant 0 : i32
    %c0_i32_1 = arith.constant 0 : i32
    %c0_i32_2 = arith.constant 0 : i32
    return %c0_i32, %c0_i32_0, %c0_i32_1 : i32, i32, i32
  }
  func.func @transform_6(%arg0: i32) -> (i32, i32) {
    %c0_i32 = arith.constant 0 : i32
    %c0_i32_0 = arith.constant 0 : i32
    %c0_i32_1 = arith.constant 0 : i32
    return %c0_i32, %c0_i32_0 : i32, i32
  }
  func.func @transform_7(%arg0: i32) -> (i32, i32, i32) {
    %c0_i32 = arith.constant 0 : i32
    %c0_i32_0 = arith.constant 0 : i32
    %c0_i32_1 = arith.constant 0 : i32
    %c0_i32_2 = arith.constant 0 : i32
    return %c0_i32, %c0_i32_0, %c0_i32_1 : i32, i32, i32
  }
  func.func @transform_8(%arg0: i32) -> (i32, i32) {
    %c0_i32 = arith.constant 0 : i32
    %c0_i32_0 = arith.constant 0 : i32
    %c0_i32_1 = arith.constant 0 : i32
    return %c0_i32, %c0_i32_0 : i32, i32
  }
  func.func @transform_9(%arg0: i32) -> (i32, i32, i32) {
    %c0_i32 = arith.constant 0 : i32
    %c0_i32_0 = arith.constant 0 : i32
    %c0_i32_1 = arith.constant 0 : i32
    return %arg0, %c0_i32, %c0_i32_0 : i32, i32, i32
  }
}

</mosaic_0001>

<bundles_post_ra>
// kernel: skip_connection_block_forward.1
= control target key start
LH: loop header
LB: loop body
LE: loop exit
PB: predicated region body
PF: predicated region fallthrough
CT: control target
= control target key end

     0   :  { %s2915_s30 = smov 0   ;;  %s3556_s0 = inlined_call_operand.vmem [shape: f32[2,4,256], index: 0, kind: input, shape index: {}]   ;;  %s3557_s1 = inlined_call_operand.vmem [shape: f32[9,8,4], index: 1, kind: input, shape index: {}]   ;;  %s3558_s2 = inlined_call_operand.vmem [shape: f32[8,1], index: 2, kind: input, shape index: {}]   ;;  %s3559_s3 = inlined_call_operand.vmem [shape: f32[9,8,8], index: 3, kind: input, shape index: {}]   ;;  %s3560_s4 = inlined_call_operand.vmem [shape: f32[8,1], index: 4, kind: input, shape index: {}]   ;;  %s3561_s5 = inlined_call_operand.vmem [shape: f32[9,4,8], index: 5, kind: input, shape index: {}]   ;;  %s3562_s6 = inlined_call_operand.vmem [shape: f32[4,1], index: 6, kind: input, shape index: {}]   ;;  %s3563_s7 = inlined_call_operand.vmem [shape: f32[9,4,4], index: 7, kind: input, shape index: {}]   ;;  %s3564_s8 = inlined_call_operand.vmem [shape: f32[4,1], index: 8, kind: input, shape index: {}]   ;;  %s3565_s9 = inlined_call_operand.vmem [shape: f32[2,4,256], index: 9, kind: output, shape index: {}]  }
   0x1 LB: > { %s2647_s10 = sadd.s32 4294967295, %s2854_s30   ;;  %p2651_p0 = scmp.ge.s32.totalorder %s2854_s30, 1  ;;  %s2854_s30 = sphi %s2915_s30, %s19_s30  }
   0x2   : > { %p287_p1 = scmp.lt.s32.totalorder %s2854_s30, 3 }
   0x4   : > { %p288_p2 = pnand %p2651_p0, %p287_p1 }
   0x5   : > { %p323_p3 = scmp.lt.s32.totalorder (!%p288_p2), %s2647_s10, 1  ;;  %s2856_s15 = smov (!%p288_p2), 17  }
   0x6   : > { %291 = sbr.rel (%p288_p2) target bundleno = 1258 (0x4ea), region = 56  ;;  %s2857_s16 = smov (!%p288_p2), 16  }
   0x7   : > { %s2858_s17 = smov (!%p288_p2), 15   ;;  %s2859_s18 = smov (!%p288_p2), 1  }
   0x8   : > { %s2860_s19 = smov (!%p288_p2), 127   ;;  %s2861_s20 = smov (!%p288_p2), 113  }
   0x9   : > { %s2862_s21 = smov (!%p288_p2), 112   ;;  %s2863_s22 = smov (!%p288_p2), 111  }
   0xb   : > { %s3673_s10 = smov (!%p323_p3, %s2647_s10), 1  ;;  %v333_v19 = vlaneseq  ;;  %vm3571_vm5 = vcmask 1043456   ;;  %vm3570_vm6 = vcmask 31744   ;;  %v390_v32 = vld [vmem:[%s3557_s1] sm:$0xff]  ;;  %v2656_v43 = vld [vmem:[%s3557_s1 + $0x8] sm:$0xff]  ;;  %v2665_v51 = vld [vmem:[%s3557_s1 + $0x10] sm:$0xff] }
   0xc   : > { %s2826_s11 = sshll.u32 %s3673_s10, 3  ;;  %v2670_v54 = vld [vmem:[%s3557_s1 + $0x18] sm:$0xff]  ;;  %v2675_v57 = vld [vmem:[%s3557_s1 + $0x20] sm:$0xff]  ;;  %v2864_v60 = vmov 0   ;;  %v2794_v27 = vld [vmem:[%s3563_s7 + $0xc] sm:$0xf] }
   0xd   : > { %s327_s14 = scalar_lea.vmem %s3556_s0, %s2826_s11  ;;  %v2962_v20 = vand.u32 127, %v333_v19  ;;  %v997_v59 = vld [vmem:[%s3558_s2] sm:$0xff]  ;;  %2845 = vset.pattern.permute.xlu1 %v2864_v60  ;;  %2846 = vset.pattern.permute.xlu0 %v2864_v60 }
   0xe   : > { %v2931_v0 = vld [vmem:[%s327_s14] sm:$0xff]  ;;  %2847 = vset.pattern.permute.xlu2 %v2864_v60 }
   0xf   : > { %370 = vst [vmem:[#allocation1] ss:$2 sm:$0xff] %v2931_v0  ;;  %v2965_v21 = vadd.s32 128, %v2962_v20  ;;  %v340_v23 = vand.u32 15, %v2962_v20  ;;  %vm3573_vm0 = vcmp.ge.s32.totalorder %v2962_v20, 16  ;;  %vm3569_vm2 = vcmp.lt.s32.totalorder %v2962_v20, 17 }
  0x10   : > { %vm3572_vm7 = vcmp.lt.s32.totalorder %v2962_v20, 15  ;;  %vm3574_vm9 = vcmp.lt.s32.totalorder %v2962_v20, 16  ;;  %vm3568_vm12 = vcmp.lt.s32.totalorder %v2962_v20, 1  ;;  %vm3566_vm13 = vcmp.lt.s32.totalorder %v2962_v20, 127  ;;  %v2576_v28 = vld [vmem:[%s3564_s8] sm:$0xf] }
  0x11   : > { %v347_v25 = vand.u32 15, %v2965_v21  ;;  %vm2970_vm1 = vcmp.ge.s32.totalorder %v340_v23, 1  ;;  %vm3003_vm8 = vcmp.lt.s32.totalorder %v340_v23, 15  ;;  %vm3576_vm14 = vcmp.lt.s32.totalorder %v2965_v21, 240  ;;  %v2819_v39 = vld [vmem:[%s3563_s7 + $0x20] sm:$0xf] }
  0x12   : > { %vm2983_vm4 = vmand %vm3573_vm0, %vm2970_vm1  ;;  %vm3567_vm15 = vcmp.lt.s32.totalorder %v2962_v20, 113 }
  0x13   : > { %vm2975_vm3 = vcmp.ge.s32.totalorder %v347_v25, 1  ;;  %vm3010_vm10 = vcmp.lt.s32.totalorder %v347_v25, 15  ;;  %vm3020_vm11 = vmand %vm3573_vm0, %vm3003_vm8  ;;  %v2695_v25 = vld [vmem:[%s3557_s1 + $0x40] sm:$0xff] }
  0x16   : > { %v371_v1 = vld.sshfl [vmem:[#allocation1] sm:$0xff pattern:$0x75316420]  ;;  %v372_v2 = vld.sshfl [vmem:[#allocation1 + $0x8] sm:$0xff pattern:$0x75316420] }
  0x17   : > { %375 = vrot.lane.b32.xlu0 %v371_v1, %s2856_s15  ;;  %391 = vst [vmem:[#allocation1] ss:$2 sm:$0xff] %v2931_v0  ;;  %v2680_v1 = vld [vmem:[%s3557_s1 + $0x28] sm:$0xff] }
  0x1e   : > { %v392_v3 = vld.sshfl [vmem:[#allocation1] sm:$0xff pattern:$0x75316420]  ;;  %v393_v4 = vld.sshfl [vmem:[#allocation1 + $0x8] sm:$0xff pattern:$0x75316420] }
  0x1f   : > { %396 = vrot.lane.b32.xlu1 %v392_v3, %s2857_s16  ;;  %377 = vrot.lane.b32.xlu0 %v372_v2, %s2856_s15  ;;  %511 = vst [vmem:[#allocation1] ss:$2 sm:$0xff] %v2931_v0 }
  0x26   : > { %v512_v5 = vld.sshfl [vmem:[#allocation1] sm:$0xff pattern:$0x75316420]  ;;  %v513_v6 = vld.sshfl [vmem:[#allocation1 + $0x8] sm:$0xff pattern:$0x75316420] }
  0x27   : > { %398 = vrot.lane.b32.xlu1 %v393_v4, %s2857_s16  ;;  %584 = vst [vmem:[#allocation1] ss:$2 sm:$0xff] %v2931_v0  ;;  %516 = vrot.lane.b32.xlu2 %v512_v5, %s2858_s17  ;;  %v2804_v5 = vld [vmem:[%s3563_s7 + $0x14] sm:$0xf] }
  0x2e   : > { %v586_v7 = vld.sshfl [vmem:[#allocation1 + $0x8] sm:$0xff pattern:$0x75316420]  ;;  %v585_v8 = vld.sshfl [vmem:[#allocation1] sm:$0xff pattern:$0x75316420] }
  0x2f   : > { %591 = vrot.lane.b32.xlu1 %v586_v7, %s2859_s18  ;;  %589 = vrot.lane.b32.xlu0 %v585_v8, %s2859_s18  ;;  %657 = vst [vmem:[#allocation1] ss:$2 sm:$0xff] %v2931_v0 }
  0x30   : > { %518 = vrot.lane.b32.xlu2 %v513_v6, %s2858_s17 }
  0x36   : > { %v2946_v9 = vld.sshfl [vmem:[#allocation1] sm:$0xff pattern:$0x75316420]  ;;  %v2948_v10 = vld.sshfl [vmem:[#allocation1 + $0x8] sm:$0xff pattern:$0x75316420] }
  0x37   : > { %709 = vst [vmem:[#allocation1] ss:$2 sm:$0xff] %v2931_v0 }
  0x3e   : > { %v711_v11 = vld.sshfl [vmem:[#allocation1 + $0x8] sm:$0xff pattern:$0x75316420]  ;;  %v710_v12 = vld.sshfl [vmem:[#allocation1] sm:$0xff pattern:$0x75316420] }
  0x3f   : > { %716 = vrot.lane.b32.xlu0 %v711_v11, %s2860_s19  ;;  %780 = vst [vmem:[#allocation1] ss:$2 sm:$0xff] %v2931_v0  ;;  %714 = vrot.lane.b32.xlu2 %v710_v12, %s2860_s19 }
  0x46   : > { %v781_v13 = vld.sshfl [vmem:[#allocation1] sm:$0xff pattern:$0x75316420]  ;;  %v782_v14 = vld.sshfl [vmem:[#allocation1 + $0x8] sm:$0xff pattern:$0x75316420] }
  0x47   : > { %785 = vrot.lane.b32.xlu1 %v781_v13, %s2861_s20  ;;  %853 = vst [vmem:[#allocation1] ss:$2 sm:$0xff] %v2931_v0  ;;  %787 = vrot.lane.b32.xlu2 %v782_v14, %s2861_s20  ;;  %v2690_v14 = vld [vmem:[%s3557_s1 + $0x38] sm:$0xff] }
  0x4e   : > { %v855_v15 = vld.sshfl [vmem:[#allocation1 + $0x8] sm:$0xff pattern:$0x75316420]  ;;  %v854_v16 = vld.sshfl [vmem:[#allocation1] sm:$0xff pattern:$0x75316420] }
  0x4f   : > { %860 = vrot.lane.b32.xlu1 %v855_v15, %s2862_s21  ;;  %858 = vrot.lane.b32.xlu0 %v854_v16, %s2862_s21  ;;  %924 = vst [vmem:[#allocation1] ss:$2 sm:$0xff] %v2931_v0 }
  0x56   : > { %v926_v17 = vld.sshfl [vmem:[#allocation1 + $0x8] sm:$0xff pattern:$0x75316420]  ;;  %v925_v18 = vld.sshfl [vmem:[#allocation1] sm:$0xff pattern:$0x75316420] }
  0x57   : > { %931 = vrot.lane.b32.xlu0 %v926_v17, %s2863_s22  ;;  %929 = vrot.lane.b32.xlu2 %v925_v18, %s2863_s22 }
  0x58   : > { %1000 = vperm.xlu1 %2845, %v997_v59  }
  0x81   : > { %v517_v24 = vpop.permute.xlu2 %516 }
  0x89   : > { %v376_v22 = vpop.permute.xlu0 %375 }
  0x8a   : > { %v519_v36 = vpop.permute.xlu2 %518 }
  0x8b   : > { %v521_v38 = vsel %vm3572_vm7, %v517_v24, %v519_v36  ;;  %v522_v40 = vsel %vm3572_vm7, %v519_v36, %v517_v24 }
  0x8c   : > { %v530_v46 = vsel %vm3010_vm10, %v521_v38, 0.0  ;;  %v529_v48 = vsel %vm3020_vm11, %v522_v40, 0.0 }
  0x91   : > { %v397_v29 = vpop.permute.xlu1 %396  ;;  %v378_v30 = vpop.permute.xlu0 %377 }
  0x92   : > { %v380_v31 = vsel %vm3569_vm2, %v376_v22, %v378_v30  ;;  %v381_v33 = vsel %vm3569_vm2, %v378_v30, %v376_v22  ;;  %vm3136_vm2 = vmand %vm3576_vm14, %vm3010_vm10 }
  0x93   : > { %v389_v34 = vsel %vm2975_vm3, %v380_v31, 0.0  ;;  %v388_v35 = vsel %vm2983_vm4, %v381_v33, 0.0 }
  0x94   : > { %2663 = vmatpush.msk.msra.mxu3 %vm3571_vm5, %v389_v34  ;;  %2661 = vmatpush.msk.msra.mxu2 %vm3571_vm5, %v388_v35 }
  0x95   : > { %2664 = vmatmul.msk.f32.vlgmr.msra.gmra.mxu3 %vm3570_vm6, %v390_v32  ;;  %2662 = vmatmul.msk.f32.vlgmr.msra.gmra.mxu2 %vm3570_vm6, %v390_v32 }
  0x99   : > { %v399_v42 = vpop.permute.xlu1 %398  ;;  %v715_v58 = vpop.permute.xlu2 %714 }
  0x9a   : > { %v401_v44 = vsel %vm3574_vm9, %v397_v29, %v399_v42  ;;  %v402_v45 = vsel %vm3574_vm9, %v399_v42, %v397_v29 }
  0x9b   : > { %2659 = vmatpush.msk.msra.mxu1 %vm3571_vm5, %v401_v44  ;;  %v407_v47 = vsel %vm3573_vm0, %v402_v45, 0.0 }
  0x9c   : > { %2660 = vmatmul.msk.f32.vlgmr.msra.gmra.mxu1 %vm3570_vm6, %v2656_v43  ;;  %2657 = vmatpush.msk.msra.mxu0 %vm3571_vm5, %v407_v47 }
  0x9d   : > { %2658 = vmatmul.msk.f32.vlgmr.msra.gmra.mxu0 %vm3570_vm6, %v2656_v43  ;;  %2668 = vmatpush.msk.msrb.mxu1 %vm3571_vm5, %v530_v46 }
  0x9e   : > { %2666 = vmatpush.msk.msrb.mxu0 %vm3571_vm5, %v529_v48 }
  0x9f   : > { %2678 = vmatpush.msk.msra.mxu1 %vm3571_vm5, %v2948_v10 }
  0xa0   : > { %2676 = vmatpush.msk.msra.mxu0 %vm3571_vm5, %v2946_v9  ;;  %v2685_v9 = vld [vmem:[%s3557_s1 + $0x30] sm:$0xff] }
  0xa1   : > { %v592_v49 = vpop.permute.xlu1 %591  ;;  %v590_v50 = vpop.permute.xlu0 %589 }
  0xa2   : > { %v594_v52 = vsel %vm3568_vm12, %v590_v50, %v592_v49  ;;  %v595_v53 = vsel %vm3568_vm12, %v592_v49, %v590_v50  ;;  %v788_v4 = vpop.permute.xlu2 %787  ;;  %vm3575_vm12 = vcmp.lt.s32.totalorder %v2962_v20, 111 }
  0xa3   : > { %v601_v55 = vsel %vm2975_vm3, %v594_v52, 0.0  ;;  %v600_v56 = vsel %vm2970_vm1, %v595_v53, 0.0 }
  0xa4   : > { %2673 = vmatpush.msk.msrb.mxu3 %vm3571_vm5, %v601_v55  ;;  %2669 = vmatmul.msk.f32.vlgmr.msrb.gmra.mxu1 %vm3570_vm6, %v2665_v51 }
  0xa5   : > { %2674 = vmatmul.msk.f32.vlgmr.msrb.gmra.mxu3 %vm3570_vm6, %v2670_v54  ;;  %2671 = vmatpush.msk.msrb.mxu2 %vm3571_vm5, %v600_v56 }
  0xa6   : > { %2667 = vmatmul.msk.f32.vlgmr.msrb.gmra.mxu0 %vm3570_vm6, %v2665_v51  ;;  %2672 = vmatmul.msk.f32.vlgmr.msrb.gmra.mxu2 %vm3570_vm6, %v2670_v54 }
  0xac   : > { %2679 = vmatmul.msk.f32.vlgmr.msra.gmra.mxu1 %vm3570_vm6, %v2675_v57 }
  0xae   : > { %2677 = vmatmul.msk.f32.vlgmr.msra.gmra.mxu0 %vm3570_vm6, %v2675_v57 }
  0xb1   : > { %v717_v61 = vpop.permute.xlu0 %716  ;;  %v930_v18 = vpop.permute.xlu2 %929 }
  0xb2   : > { %v719_v62 = vsel %vm3566_vm13, %v715_v58, %v717_v61  ;;  %v720_v63 = vsel %vm3566_vm13, %v717_v61, %v715_v58  ;;  %vm3098_vm13 = vmand %vm3576_vm14, %vm2975_vm3 }
  0xb3   : > { %v725_v2 = vsel %vm3003_vm8, %v719_v62, 0.0  ;;  %v726_v3 = vsel %vm3010_vm10, %v720_v63, 0.0 }
  0xb4   : > { %2681 = vmatpush.msk.msra.mxu2 %vm3571_vm5, %v725_v2  ;;  %2683 = vmatpush.msk.msra.mxu3 %vm3571_vm5, %v726_v3 }
  0xb5   : > { %2682 = vmatmul.msk.f32.vlgmr.msra.gmra.mxu2 %vm3570_vm6, %v2680_v1  ;;  %2684 = vmatmul.msk.f32.vlgmr.msra.gmra.mxu3 %vm3570_vm6, %v2680_v1 }
  0xb9   : > { %v786_v6 = vpop.permute.xlu1 %785 }
  0xba   : > { %v790_v7 = vsel %vm3567_vm15, %v786_v6, %v788_v4  ;;  %v791_v8 = vsel %vm3567_vm15, %v788_v4, %v786_v6  ;;  %vm3577_vm15 = vcmp.lt.s32.totalorder %v2962_v20, 112 }
  0xbb   : > { %v798_v10 = vsel %vm2970_vm1, %v790_v7, 0.0  ;;  %v799_v11 = vsel %vm3098_vm13, %v791_v8, 0.0 }
  0xbc   : > { %2686 = vmatpush.msk.msrb.mxu0 %vm3571_vm5, %v798_v10  ;;  %2688 = vmatpush.msk.msrb.mxu1 %vm3571_vm5, %v799_v11 }
  0xbd   : > { %2687 = vmatmul.msk.f32.vlgmr.msrb.gmra.mxu0 %vm3570_vm6, %v2685_v9  ;;  %2689 = vmatmul.msk.f32.vlgmr.msrb.gmra.mxu1 %vm3570_vm6, %v2685_v9 }
  0xc1   : > { %v861_v12 = vpop.permute.xlu1 %860  ;;  %v859_v13 = vpop.permute.xlu0 %858 }
  0xc2   : > { %v863_v15 = vsel %vm3577_vm15, %v859_v13, %v861_v12  ;;  %v864_v16 = vsel %vm3577_vm15, %v861_v12, %v859_v13 }
  0xc3   : > { %v870_v17 = vsel %vm3576_vm14, %v864_v16, 0.0  ;;  %2691 = vmatpush.msk.msrb.mxu2 %vm3571_vm5, %v863_v15  ;;  %v2700_v15 = vld [vmem:[%s3559_s3 + $0x8] sm:$0xff] }
  0xc4   : > { %2692 = vmatmul.msk.f32.vlgmr.msrb.gmra.mxu2 %vm3570_vm6, %v2690_v14  ;;  %2693 = vmatpush.msk.msrb.mxu3 %vm3571_vm5, %v870_v17 }
  0xc5   : > { %2694 = vmatmul.msk.f32.vlgmr.msrb.gmra.mxu3 %vm3570_vm6, %v2690_v14 }
  0xc9   : > { %v932_v22 = vpop.permute.xlu0 %931 }
  0xca   : > { %v934_v23 = vsel %vm3575_vm12, %v930_v18, %v932_v22  ;;  %v935_v24 = vsel %vm3575_vm12, %v932_v22, %v930_v18  ;;  %v1001_v1 = vpop.permute.xlu1 %1000 }
  0xcb   : > { %v942_v29 = vsel %vm3003_vm8, %v934_v23, 0.0  ;;  %v943_v30 = vsel %vm3136_vm2, %v935_v24, 0.0  ;;  %v1490_v24 = vld [vmem:[%s3560_s4] sm:$0xff] }
  0xcc   : > { %2696 = vmatpush.msk.msra.mxu0 %vm3571_vm5, %v942_v29  ;;  %2698 = vmatpush.msk.msra.mxu1 %vm3571_vm5, %v943_v30  ;;  %v1015_v30 = vld [vmem:[%s3559_s3] sm:$0xff]  ;;  %vm3594_vm5 = vcmp.lt.s32.totalorder %v2962_v20, 17 }
  0xcd   : > { %2697 = vmatmul.msk.f32.vlgmr.msra.gmra.mxu0 %vm3570_vm6, %v2695_v25  ;;  %2699 = vmatmul.msk.f32.vlgmr.msra.gmra.mxu1 %vm3570_vm6, %v2695_v25  ;;  %vm1026_vm6 = vcmask 64512  }
 0x118   : > { %v488_v33 = vpop.f32.mrf.mxu2  ;;  %v508_v34 = vpop.f32.mrf.mxu3 }
 0x119   : > { %v459_v32 = vpop.f32.mrf.mxu1 }
 0x11a   : > { %v439_v31 = vpop.f32.mrf.mxu0  ;;  %v509_v40 = vadd.f32 %v508_v34, %v459_v32 }
 0x11b   : > { %v489_v38 = vadd.f32 %v488_v33, %v439_v31  ;;  %v2708_v31 = vld [vmem:[%s3559_s3 + $0x10] sm:$0xff] }
 0x121   : > { %v579_v36 = vpop.f32.mrf.mxu1 }
 0x122   : > { %v583_v46 = vadd.f32 %v579_v36, %v509_v40 }
 0x123   : > { %v559_v35 = vpop.f32.mrf.mxu0 }
 0x124   : > { %v582_v43 = vadd.f32 %v559_v35, %v489_v38 }
 0x128   : > { %v650_v44 = vpop.f32.mrf.mxu3 }
 0x129   : > { %v630_v42 = vpop.f32.mrf.mxu2  ;;  %v704_v47 = vpop.f32.mrf.mxu1  ;;  %v654_v49 = vadd.f32 %v650_v44, %v583_v46  ;;  %v2713_v44 = vld [vmem:[%s3559_s3 + $0x18] sm:$0xff] }
 0x12a   : > { %v653_v48 = vadd.f32 %v630_v42, %v582_v43 }
 0x12b   : > { %v684_v45 = vpop.f32.mrf.mxu0  ;;  %v708_v53 = vadd.f32 %v704_v47, %v654_v49 }
 0x12c   : > { %v707_v51 = vadd.f32 %v684_v45, %v653_v48  ;;  %v2718_v45 = vld [vmem:[%s3559_s3 + $0x20] sm:$0xff] }
 0x138   : > { %v755_v50 = vpop.f32.mrf.mxu2  ;;  %v775_v52 = vpop.f32.mrf.mxu3 }
 0x139   : > { %v778_v54 = vadd.f32 %v755_v50, %v707_v51  ;;  %v779_v57 = vadd.f32 %v775_v52, %v708_v53  ;;  %v2721_v51 = vld [vmem:[%s3559_s3 + $0x28] sm:$0xff]  ;;  %v2726_v52 = vld [vmem:[%s3559_s3 + $0x30] sm:$0xff] }
 0x13a   : > { %v828_v55 = vpop.f32.mrf.mxu0  ;;  %v848_v56 = vpop.f32.mrf.mxu1 }
 0x13b   : > { %v851_v58 = vadd.f32 %v828_v55, %v778_v54  ;;  %v852_v59 = vadd.f32 %v848_v56, %v779_v57 }
 0x147   : > { %v899_v60 = vpop.f32.mrf.mxu2 }
 0x148   : > { %v922_v61 = vadd.f32 %v899_v60, %v851_v58  ;;  %v919_v62 = vpop.f32.mrf.mxu3  ;;  %v2731_v60 = vld [vmem:[%s3559_s3 + $0x38] sm:$0xff] }
 0x149   : > { %v923_v63 = vadd.f32 %v919_v62, %v852_v59 }
 0x14a   : > { %v972_v2 = vpop.f32.mrf.mxu0  ;;  %v992_v3 = vpop.f32.mrf.mxu1 }
 0x14b   : > { %v995_v4 = vadd.f32 %v972_v2, %v922_v61  ;;  %v996_v6 = vadd.f32 %v992_v3, %v923_v63  ;;  %v2735_v61 = vld [vmem:[%s3559_s3 + $0x40] sm:$0xff] }
 0x14d   : > { %v1003_v7 = vadd.f32 %v1001_v1, %v995_v4  ;;  %v1004_v8 = vadd.f32 %v1001_v1, %v996_v6 }
 0x14f   : > { %v1005_v9 = vmax.f32 %v1003_v7, 0.0  ;;  %v1006_v10 = vmax.f32 %v1004_v8, 0.0 }
 0x151   : > { %1018 = vrot.lane.b32.xlu0 %v1006_v10, %s2857_s16  ;;  %1113 = vrot.lane.b32.xlu1 %v1005_v9, %s2858_s17 }
 0x152   : > { %1016 = vrot.lane.b32.xlu2 %v1005_v9, %s2857_s16 }
 0x159   : > { %1007 = vrot.lane.b32.xlu0 %v1005_v9, %s2856_s15  ;;  %1009 = vrot.lane.b32.xlu1 %v1006_v10, %s2856_s15 }
 0x15a   : > { %1115 = vrot.lane.b32.xlu2 %v1006_v10, %s2858_s17 }
 0x161   : > { %1170 = vrot.lane.b32.xlu0 %v1006_v10, %s2859_s18  ;;  %1325 = vrot.lane.b32.xlu1 %v1005_v9, %s2861_s20 }
 0x162   : > { %1168 = vrot.lane.b32.xlu2 %v1005_v9, %s2859_s18 }
 0x169   : > { %1270 = vrot.lane.b32.xlu0 %v1005_v9, %s2860_s19  ;;  %1272 = vrot.lane.b32.xlu1 %v1006_v10, %s2860_s19 }
 0x16a   : > { %1327 = vrot.lane.b32.xlu2 %v1006_v10, %s2861_s20 }
 0x171   : > { %1437 = vrot.lane.b32.xlu0 %v1006_v10, %s2863_s22  ;;  %1380 = vrot.lane.b32.xlu1 %v1005_v9, %s2862_s21 }
 0x172   : > { %1435 = vrot.lane.b32.xlu2 %v1005_v9, %s2863_s22 }
 0x179   : > { %1493 = vperm.xlu0 %2846, %v1490_v24  }
 0x17a   : > { %1382 = vrot.lane.b32.xlu2 %v1006_v10, %s2862_s21 }
 0x1ac   : > { %v1017_v11 = vpop.permute.xlu2 %1016 }
 0x1b4   : > { %v1116_v12 = vpop.permute.xlu2 %1115 }
 0x1bc   : > { %v1169_v16 = vpop.permute.xlu2 %1168 }
 0x1c3   : > { %v1019_v13 = vpop.permute.xlu0 %1018  ;;  %v1114_v14 = vpop.permute.xlu1 %1113 }
 0x1c4   : > { %v1020_v17 = vsel %vm3574_vm9, %v1017_v11, %v1019_v13  ;;  %v1021_v18 = vsel %vm3574_vm9, %v1019_v13, %v1017_v11  ;;  %v1117_v22 = vsel %vm3572_vm7, %v1114_v14, %v1116_v12  ;;  %v1118_v23 = vsel %vm3572_vm7, %v1116_v12, %v1114_v14  ;;  %vm3595_vm7 = vmmov %vm3594_vm5  ;;  %v1328_v34 = vpop.permute.xlu2 %1327 }
 0x1c5   : > { %2701 = vmatpush.msk.msra.mxu2 %vm3573_vm0, %v1021_v18  ;;  %1065 = vmatpush.msra.mxu3 %v1020_v17  ;;  %vm3598_vm0 = vcmp.lt.s32.totalorder %v2962_v20, 113 }
 0x1c6   : > { %2702 = vmatmul.msk.f32.vlgmr.msra.gmra.mxu2 %vm1026_vm6, %v2700_v15  ;;  %2703 = vmatmul.msk.f32.vlgmr.msra.gmra.mxu3 %vm1026_vm6, %v2700_v15  ;;  %vm3599_vm9 = vmmov %vm3598_vm0 }
 0x1c7   : > { %2709 = vmatpush.msk.msrb.mxu2 %vm3020_vm11, %v1118_v23  ;;  %2711 = vmatpush.msk.msrb.mxu3 %vm3010_vm10, %v1117_v22 }
 0x1c9   : > { %1243 = vmatpush.msra.mxu2 %v1005_v9  ;;  %1263 = vmatpush.msra.mxu3 %v1006_v10 }
 0x1cb   : > { %v1008_v25 = vpop.permute.xlu0 %1007  ;;  %v1010_v29 = vpop.permute.xlu1 %1009 }
 0x1cc   : > { %v1011_v32 = vsel %vm3594_vm5, %v1008_v25, %v1010_v29  ;;  %v1012_v33 = vsel %vm3595_vm7, %v1010_v29, %v1008_v25  ;;  %vm3596_vm5 = vcmp.lt.s32.totalorder %v2962_v20, 1  ;;  %v1436_v46 = vpop.permute.xlu2 %1435 }
 0x1cd   : > { %2704 = vmatpush.msk.msrb.mxu0 %vm2983_vm4, %v1012_v33  ;;  %2706 = vmatpush.msk.msrb.mxu1 %vm2975_vm3, %v1011_v32  ;;  %vm3597_vm7 = vmmov %vm3596_vm5 }
 0x1ce   : > { %2705 = vmatmul.msk.f32.vlgmr.msrb.gmra.mxu0 %vm1026_vm6, %v1015_v30  ;;  %2710 = vmatmul.msk.f32.vlgmr.msrb.gmra.mxu2 %vm1026_vm6, %v2708_v31 }
 0x1cf   : > { %2712 = vmatmul.msk.f32.vlgmr.msrb.gmra.mxu3 %vm1026_vm6, %v2708_v31  ;;  %2707 = vmatmul.msk.f32.vlgmr.msrb.gmra.mxu1 %vm1026_vm6, %v1015_v30 }
 0x1d3   : > { %v1171_v35 = vpop.permute.xlu0 %1170  ;;  %v1326_v36 = vpop.permute.xlu1 %1325 }
 0x1d4   : > { %v1172_v38 = vsel %vm3596_vm5, %v1169_v16, %v1171_v35  ;;  %v1173_v40 = vsel %vm3597_vm7, %v1171_v35, %v1169_v16  ;;  %v1329_v42 = vsel %vm3598_vm0, %v1326_v36, %v1328_v34  ;;  %v1330_v43 = vsel %vm3599_vm9, %v1328_v34, %v1326_v36  ;;  %v1383_v53 = vpop.permute.xlu2 %1382 }
 0x1d5   : > { %2714 = vmatpush.msk.msra.mxu0 %vm2970_vm1, %v1173_v40  ;;  %2716 = vmatpush.msk.msra.mxu1 %vm2975_vm3, %v1172_v38  ;;  %vm3600_vm0 = vcmp.lt.s32.totalorder %v2962_v20, 127  ;;  %vm3602_vm5 = vcmp.lt.s32.totalorder %v2962_v20, 17 }
 0x1d6   : > { %2727 = vmatpush.msk.msrb.mxu2 %vm2970_vm1, %v1329_v42  ;;  %2729 = vmatpush.msk.msrb.mxu3 %vm3098_vm13, %v1330_v43  ;;  %vm3601_vm9 = vmmov %vm3600_vm0 }
 0x1d7   : > { %2715 = vmatmul.msk.f32.vlgmr.msra.gmra.mxu0 %vm1026_vm6, %v2713_v44  ;;  %2719 = vmatmul.msk.f32.vlgmr.msra.gmra.mxu2 %vm1026_vm6, %v2718_v45  ;;  %vm3603_vm7 = vmmov %vm3602_vm5 }
 0x1d8   : > { %2720 = vmatmul.msk.f32.vlgmr.msra.gmra.mxu3 %vm1026_vm6, %v2718_v45  ;;  %2717 = vmatmul.msk.f32.vlgmr.msra.gmra.mxu1 %vm1026_vm6, %v2713_v44 }
 0x1db   : > { %v1271_v47 = vpop.permute.xlu0 %1270  ;;  %v1273_v48 = vpop.permute.xlu1 %1272 }
 0x1dc   : > { %v1274_v49 = vsel %vm3600_vm0, %v1271_v47, %v1273_v48  ;;  %v1275_v50 = vsel %vm3601_vm9, %v1273_v48, %v1271_v47  ;;  %v1982_v48 = vld [vmem:[%s3562_s6] sm:$0xf]  ;;  %vm3604_vm0 = vcmp.lt.s32.totalorder %v2962_v20, 1 }
 0x1dd   : > { %2722 = vmatpush.msk.msrb.mxu0 %vm3003_vm8, %v1274_v49  ;;  %2724 = vmatpush.msk.msrb.mxu1 %vm3010_vm10, %v1275_v50  ;;  %vm3605_vm9 = vmmov %vm3604_vm0 }
 0x1df   : > { %2723 = vmatmul.msk.f32.vlgmr.msrb.gmra.mxu0 %vm1026_vm6, %v2721_v51  ;;  %2728 = vmatmul.msk.f32.vlgmr.msrb.gmra.mxu2 %vm1026_vm6, %v2726_v52 }
 0x1e0   : > { %2730 = vmatmul.msk.f32.vlgmr.msrb.gmra.mxu3 %vm1026_vm6, %v2726_v52  ;;  %2725 = vmatmul.msk.f32.vlgmr.msrb.gmra.mxu1 %vm1026_vm6, %v2721_v51 }
 0x1e3   : > { %v1438_v54 = vpop.permute.xlu0 %1437  ;;  %v1381_v55 = vpop.permute.xlu1 %1380 }
 0x1e4   : > { %v1439_v56 = vsel %vm3575_vm12, %v1436_v46, %v1438_v54  ;;  %v1440_v57 = vsel %vm3575_vm12, %v1438_v54, %v1436_v46  ;;  %v1384_v58 = vsel %vm3577_vm15, %v1381_v55, %v1383_v53  ;;  %v1385_v59 = vsel %vm3577_vm15, %v1383_v53, %v1381_v55  ;;  %v1508_v53 = vld [vmem:[%s3561_s5] sm:$0xf] }
 0x1e5   : > { %1408 = vmatpush.msra.mxu0 %v1384_v58  ;;  %2733 = vmatpush.msk.msra.mxu1 %vm3576_vm14, %v1385_v59  ;;  %vm3608_vm12 = vcmp.ge.s32.totalorder %v2962_v20, 16 }
 0x1e6   : > { %2736 = vmatpush.msk.msra.mxu2 %vm3003_vm8, %v1439_v56  ;;  %2738 = vmatpush.msk.msra.mxu3 %vm3136_vm2, %v1440_v57 }
 0x1e7   : > { %2732 = vmatmul.msk.f32.vlgmr.msra.gmra.mxu0 %vm1026_vm6, %v2731_v60  ;;  %2737 = vmatmul.msk.f32.vlgmr.msra.gmra.mxu2 %vm1026_vm6, %v2735_v61 }
 0x1e8   : > { %2739 = vmatmul.msk.f32.vlgmr.msra.gmra.mxu3 %vm1026_vm6, %v2735_v61  ;;  %2734 = vmatmul.msk.f32.vlgmr.msra.gmra.mxu1 %vm1026_vm6, %v2731_v60 }
 0x1eb   : > { %v1494_v38 = vpop.permute.xlu0 %1493 }
 0x249   : > { %v1047_v62 = vpop.f32.mrf.mxu2  ;;  %v1067_v63 = vpop.f32.mrf.mxu3 }
 0x24b   : > { %v1090_v1 = vpop.f32.mrf.mxu0 }
 0x24c   : > { %v1110_v2 = vpop.f32.mrf.mxu1  ;;  %v1091_v10 = vadd.f32 %v1090_v1, %v1047_v62  ;;  %v2753_v1 = vld [vmem:[%s3561_s5 + $0xc] sm:$0xf] }
 0x24d   : > { %v1111_v4 = vadd.f32 %v1110_v2, %v1067_v63  ;;  %v2740_v63 = vld [vmem:[%s3561_s5 + $0x4] sm:$0xf] }
 0x251   : > { %v1143_v3 = vpop.f32.mrf.mxu2 }
 0x252   : > { %v1163_v6 = vpop.f32.mrf.mxu3  ;;  %v1166_v11 = vadd.f32 %v1143_v3, %v1091_v10 }
 0x253   : > { %v1167_v9 = vadd.f32 %v1163_v6, %v1111_v4 }
 0x254   : > { %v1198_v7 = vpop.f32.mrf.mxu0 }
 0x255   : > { %v1218_v8 = vpop.f32.mrf.mxu1  ;;  %v1221_v16 = vadd.f32 %v1198_v7, %v1166_v11  ;;  %v2761_v11 = vld [vmem:[%s3561_s5 + $0x14] sm:$0xf] }
 0x256   : > { %v1222_v12 = vadd.f32 %v1218_v8, %v1167_v9  ;;  %v2748_v8 = vld [vmem:[%s3561_s5 + $0x8] sm:$0xf] }
 0x25a   : > { %v1245_v13 = vpop.f32.mrf.mxu2 }
 0x25b   : > { %v1265_v14 = vpop.f32.mrf.mxu3  ;;  %v1268_v22 = vadd.f32 %v1245_v13, %v1221_v16 }
 0x25c   : > { %v1300_v15 = vpop.f32.mrf.mxu0  ;;  %v1269_v18 = vadd.f32 %v1265_v14, %v1222_v12 }
 0x25d   : > { %v1320_v17 = vpop.f32.mrf.mxu1  ;;  %v1323_v25 = vadd.f32 %v1300_v15, %v1268_v22  ;;  %v2758_v15 = vld [vmem:[%s3561_s5 + $0x10] sm:$0xf]  ;;  %v2771_v22 = vld [vmem:[%s3561_s5 + $0x1c] sm:$0xf] }
 0x25e   : > { %v1324_v23 = vadd.f32 %v1320_v17, %v1269_v18 }
 0x262   : > { %v1355_v24 = vpop.f32.mrf.mxu2 }
 0x263   : > { %v1375_v29 = vpop.f32.mrf.mxu3  ;;  %v1378_v30 = vadd.f32 %v1355_v24, %v1323_v25  ;;  %v2766_v25 = vld [vmem:[%s3561_s5 + $0x18] sm:$0xf] }
 0x264   : > { %v1379_v31 = vadd.f32 %v1375_v29, %v1324_v23  ;;  %v1410_v32 = vpop.f32.mrf.mxu0 }
 0x265   : > { %v1430_v33 = vpop.f32.mrf.mxu1  ;;  %v1433_v34 = vadd.f32 %v1410_v32, %v1378_v30 }
 0x266   : > { %v1434_v35 = vadd.f32 %v1430_v33, %v1379_v31  ;;  %v2775_v33 = vld [vmem:[%s3561_s5 + $0x20] sm:$0xf] }
 0x26a   : > { %v1465_v36 = vpop.f32.mrf.mxu2 }
 0x26b   : > { %v1488_v40 = vadd.f32 %v1465_v36, %v1433_v34  ;;  %v1485_v42 = vpop.f32.mrf.mxu3 }
 0x26c   : > { %v1489_v43 = vadd.f32 %v1485_v42, %v1434_v35 }
 0x26d   : > { %v1496_v44 = vadd.f32 %v1494_v38, %v1488_v40 }
 0x26e   : > { %v1497_v45 = vadd.f32 %v1494_v38, %v1489_v43 }
 0x26f   : > { %v1498_v46 = vmax.f32 %v1496_v44, 0.0 }
 0x270   : > { %v1499_v47 = vmax.f32 %v1497_v45, 0.0 }
 0x271   : > { %1605 = vrot.lane.b32.xlu0 %v1498_v46, %s2858_s17  ;;  %1500 = vrot.lane.b32.xlu1 %v1498_v46, %s2856_s15 }
 0x272   : > { %1502 = vrot.lane.b32.xlu2 %v1499_v47, %s2856_s15 }
 0x279   : > { %1662 = vrot.lane.b32.xlu0 %v1499_v47, %s2859_s18  ;;  %1509 = vrot.lane.b32.xlu1 %v1498_v46, %s2857_s16 }
 0x27a   : > { %1511 = vrot.lane.b32.xlu2 %v1499_v47, %s2857_s16 }
 0x281   : > { %1817 = vrot.lane.b32.xlu0 %v1498_v46, %s2861_s20  ;;  %1607 = vrot.lane.b32.xlu1 %v1499_v47, %s2858_s17 }
 0x282   : > { %1660 = vrot.lane.b32.xlu2 %v1498_v46, %s2859_s18 }
 0x289   : > { %1874 = vrot.lane.b32.xlu0 %v1499_v47, %s2862_s21  ;;  %1762 = vrot.lane.b32.xlu1 %v1498_v46, %s2860_s19 }
 0x28a   : > { %1764 = vrot.lane.b32.xlu2 %v1499_v47, %s2860_s19 }
 0x291   : > { %1985 = vperm.xlu0 %2846, %v1982_v48   ;;  %1819 = vrot.lane.b32.xlu1 %v1499_v47, %s2861_s20 }
 0x292   : > { %1872 = vrot.lane.b32.xlu2 %v1498_v46, %s2862_s21 }
 0x299   : > { %1927 = vrot.lane.b32.xlu1 %v1498_v46, %s2863_s22 }
 0x29a   : > { %1929 = vrot.lane.b32.xlu2 %v1499_v47, %s2863_s22 }
 0x2cc   : > { %v1503_v49 = vpop.permute.xlu2 %1502 }
 0x2d4   : > { %v1512_v50 = vpop.permute.xlu2 %1511 }
 0x2dc   : > { %v1661_v56 = vpop.permute.xlu2 %1660 }
 0x2e3   : > { %v1606_v51 = vpop.permute.xlu0 %1605  ;;  %v1501_v52 = vpop.permute.xlu1 %1500 }
 0x2e4   : > { %v1504_v54 = vsel %vm3602_vm5, %v1501_v52, %v1503_v49  ;;  %v1505_v55 = vsel %vm3603_vm7, %v1503_v49, %v1501_v52  ;;  %vm3606_vm5 = vcmp.lt.s32.totalorder %v2962_v20, 16  ;;  %v1765_v2 = vpop.permute.xlu2 %1764 }
 0x2e5   : > { %2744 = vmatpush.msk.msrb.mxu2 %vm2983_vm4, %v1505_v55  ;;  %2746 = vmatpush.msk.msrb.mxu3 %vm2975_vm3, %v1504_v54  ;;  %vm3607_vm7 = vmmov %vm3606_vm5 }
 0x2e6   : > { %2747 = vmatmul.msk.f32.vlgmr.msrb.gmra.mxu3 %vm1026_vm6, %v1508_v53  ;;  %2745 = vmatmul.msk.f32.vlgmr.msrb.gmra.mxu2 %vm1026_vm6, %v1508_v53 }
 0x2eb   : > { %v1663_v57 = vpop.permute.xlu0 %1662  ;;  %v1510_v58 = vpop.permute.xlu1 %1509 }
 0x2ec   : > { %v1664_v59 = vsel %vm3604_vm0, %v1661_v56, %v1663_v57  ;;  %v1665_v60 = vsel %vm3605_vm9, %v1663_v57, %v1661_v56  ;;  %v1513_v61 = vsel %vm3606_vm5, %v1510_v58, %v1512_v50  ;;  %v1514_v62 = vsel %vm3607_vm7, %v1512_v50, %v1510_v58  ;;  %v1873_v12 = vpop.permute.xlu2 %1872 }
 0x2ed   : > { %2741 = vmatpush.msk.msrb.mxu0 %vm3608_vm12, %v1514_v62  ;;  %1557 = vmatpush.msrb.mxu1 %v1513_v61  ;;  %vm3609_vm12 = vcmp.lt.s32.totalorder %v2962_v20, 15  ;;  %vm3611_vm9 = vcmp.lt.s32.totalorder %v2962_v20, 127  ;;  %vm3613_vm7 = vcmp.lt.s32.totalorder %v2962_v20, 113 }
 0x2ee   : > { %2754 = vmatpush.msk.msra.mxu2 %vm2970_vm1, %v1665_v60  ;;  %2756 = vmatpush.msk.msra.mxu3 %vm2975_vm3, %v1664_v59  ;;  %vm3610_vm0 = vmmov %vm3609_vm12 }
 0x2ef   : > { %2742 = vmatmul.msk.f32.vlgmr.msrb.gmra.mxu0 %vm1026_vm6, %v2740_v63  ;;  %2743 = vmatmul.msk.f32.vlgmr.msrb.gmra.mxu1 %vm1026_vm6, %v2740_v63  ;;  %vm3612_vm5 = vmmov %vm3611_vm9 }
 0x2f0   : > { %2755 = vmatmul.msk.f32.vlgmr.msra.gmra.mxu2 %vm1026_vm6, %v2753_v1  ;;  %2757 = vmatmul.msk.f32.vlgmr.msra.gmra.mxu3 %vm1026_vm6, %v2753_v1 }
 0x2f3   : > { %v1818_v3 = vpop.permute.xlu0 %1817  ;;  %v1608_v4 = vpop.permute.xlu1 %1607 }
 0x2f4   : > { %v1609_v6 = vsel %vm3609_vm12, %v1606_v51, %v1608_v4  ;;  %v1610_v7 = vsel %vm3610_vm0, %v1608_v4, %v1606_v51  ;;  %vm3614_vm12 = vmmov %vm3613_vm7  ;;  %v1930_v29 = vpop.permute.xlu2 %1929  ;;  %vm3615_vm0 = vcmp.lt.s32.totalorder %v2962_v20, 111 }
 0x2f5   : > { %2749 = vmatpush.msk.msra.mxu0 %vm3020_vm11, %v1610_v7  ;;  %2751 = vmatpush.msk.msra.mxu1 %vm3010_vm10, %v1609_v6 }
 0x2f7   : > { %1735 = vmatpush.msrb.mxu0 %v1498_v46  ;;  %1755 = vmatpush.msrb.mxu1 %v1499_v47 }
 0x2f8   : > { %2750 = vmatmul.msk.f32.vlgmr.msra.gmra.mxu0 %vm1026_vm6, %v2748_v8  ;;  %2752 = vmatmul.msk.f32.vlgmr.msra.gmra.mxu1 %vm1026_vm6, %v2748_v8 }
 0x2fb   : > { %v1875_v9 = vpop.permute.xlu0 %1874  ;;  %v1763_v10 = vpop.permute.xlu1 %1762 }
 0x2fc   : > { %v1766_v13 = vsel %vm3611_vm9, %v1763_v10, %v1765_v2  ;;  %v1767_v14 = vsel %vm3612_vm5, %v1765_v2, %v1763_v10  ;;  %v1876_v16 = vsel %vm3577_vm15, %v1873_v12, %v1875_v9  ;;  %v1877_v17 = vsel %vm3577_vm15, %v1875_v9, %v1873_v12  ;;  %vm3616_vm9 = vmmov %vm3615_vm0 }
 0x2fd   : > { %2762 = vmatpush.msk.msrb.mxu2 %vm3003_vm8, %v1766_v13  ;;  %2764 = vmatpush.msk.msrb.mxu3 %vm3010_vm10, %v1767_v14  ;;  %vm3618_vm5 = vcmp.lt.s32.totalorder %v2962_v20, 16  ;;  %vm3625_vm15 = vcmp.lt.s32.totalorder %v2962_v20, 15 }
 0x2fe   : > { %2763 = vmatmul.msk.f32.vlgmr.msrb.gmra.mxu2 %vm1026_vm6, %v2761_v11  ;;  %2765 = vmatmul.msk.f32.vlgmr.msrb.gmra.mxu3 %vm1026_vm6, %v2761_v11 }
 0x2ff   : > { %1900 = vmatpush.msra.mxu2 %v1876_v16  ;;  %2773 = vmatpush.msk.msra.mxu3 %vm3576_vm14, %v1877_v17 }
 0x300   : > { %2759 = vmatmul.msk.f32.vlgmr.msrb.gmra.mxu0 %vm1026_vm6, %v2758_v15  ;;  %2760 = vmatmul.msk.f32.vlgmr.msrb.gmra.mxu1 %vm1026_vm6, %v2758_v15 }
 0x303   : > { %v1820_v18 = vpop.permute.xlu1 %1819  ;;  %v1986_v9 = vpop.permute.xlu0 %1985 }
 0x304   : > { %v1821_v23 = vsel %vm3613_vm7, %v1818_v3, %v1820_v18  ;;  %v1822_v24 = vsel %vm3614_vm12, %v1820_v18, %v1818_v3  ;;  %vm3619_vm7 = vmmov %vm3618_vm5  ;;  %vm3620_vm12 = vcmp.ge.s32.totalorder %v2962_v20, 16 }
 0x305   : > { %2767 = vmatpush.msk.msra.mxu0 %vm2970_vm1, %v1821_v23  ;;  %2769 = vmatpush.msk.msra.mxu1 %vm3098_vm13, %v1822_v24 }
 0x306   : > { %2772 = vmatmul.msk.f32.vlgmr.msra.gmra.mxu2 %vm1026_vm6, %v2771_v22  ;;  %2774 = vmatmul.msk.f32.vlgmr.msra.gmra.mxu3 %vm1026_vm6, %v2771_v22 }
 0x308   : > { %2768 = vmatmul.msk.f32.vlgmr.msra.gmra.mxu0 %vm1026_vm6, %v2766_v25  ;;  %2770 = vmatmul.msk.f32.vlgmr.msra.gmra.mxu1 %vm1026_vm6, %v2766_v25 }
 0x30b   : > { %v1928_v30 = vpop.permute.xlu1 %1927 }
 0x30c   : > { %v1931_v31 = vsel %vm3615_vm0, %v1928_v30, %v1930_v29  ;;  %v1932_v32 = vsel %vm3616_vm9, %v1930_v29, %v1928_v30 }
 0x30d   : > { %2776 = vmatpush.msk.msrb.mxu0 %vm3003_vm8, %v1931_v31  ;;  %2778 = vmatpush.msk.msrb.mxu1 %vm3136_vm2, %v1932_v32 }
 0x310   : > { %2777 = vmatmul.msk.f32.vlgmr.msrb.gmra.mxu0 %vm1026_vm6, %v2775_v33  ;;  %2779 = vmatmul.msk.f32.vlgmr.msrb.gmra.mxu1 %vm1026_vm6, %v2775_v33  ;;  %vm3617_vm6 = vcmask 1043456  }
 0x311   : > { %vm3621_vm0 = vmmov %vm3617_vm6 }
 0x312   : > { %vm3622_vm9 = vmmov %vm3621_vm0 }
 0x369   : > { %v1582_v36 = vpop.f32.mrf.mxu2  ;;  %v1602_v38 = vpop.f32.mrf.mxu3 }
 0x36c   : > { %v1539_v34 = vpop.f32.mrf.mxu0  ;;  %v1559_v35 = vpop.f32.mrf.mxu1 }
 0x36d   : > { %v1603_v45 = vadd.f32 %v1602_v38, %v1559_v35  ;;  %v1583_v46 = vadd.f32 %v1582_v36, %v1539_v34 }
 0x373   : > { %v1690_v43 = vpop.f32.mrf.mxu2  ;;  %v1710_v44 = vpop.f32.mrf.mxu3 }
 0x375   : > { %v1635_v40 = vpop.f32.mrf.mxu0  ;;  %v1655_v42 = vpop.f32.mrf.mxu1 }
 0x376   : > { %v1658_v47 = vadd.f32 %v1635_v40, %v1583_v46  ;;  %v1659_v48 = vadd.f32 %v1655_v42, %v1603_v45  ;;  %v2780_v45 = vld [vmem:[%s3563_s7 + $0x4] sm:$0xf] }
 0x378   : > { %v1713_v51 = vadd.f32 %v1690_v43, %v1658_v47  ;;  %v1714_v52 = vadd.f32 %v1710_v44, %v1659_v48 }
 0x37d   : > { %v1737_v49 = vpop.f32.mrf.mxu0  ;;  %v1757_v50 = vpop.f32.mrf.mxu1 }
 0x37e   : > { %v1760_v55 = vadd.f32 %v1737_v49, %v1713_v51  ;;  %v1761_v56 = vadd.f32 %v1757_v50, %v1714_v52 }
 0x381   : > { %v1792_v53 = vpop.f32.mrf.mxu2  ;;  %v1812_v54 = vpop.f32.mrf.mxu3 }
 0x382   : > { %v1815_v57 = vadd.f32 %v1792_v53, %v1760_v55  ;;  %v1816_v58 = vadd.f32 %v1812_v54, %v1761_v56  ;;  %v2789_v56 = vld [vmem:[%s3563_s7 + $0x8] sm:$0xf] }
 0x385   : > { %v1847_v59 = vpop.f32.mrf.mxu0  ;;  %v1867_v60 = vpop.f32.mrf.mxu1 }
 0x386   : > { %v1870_v61 = vadd.f32 %v1847_v59, %v1815_v57  ;;  %v1871_v62 = vadd.f32 %v1867_v60, %v1816_v58 }
 0x389   : > { %v1902_v63 = vpop.f32.mrf.mxu2  ;;  %v1922_v1 = vpop.f32.mrf.mxu3 }
 0x38a   : > { %v1925_v2 = vadd.f32 %v1902_v63, %v1870_v61  ;;  %v1926_v3 = vadd.f32 %v1922_v1, %v1871_v62 }
 0x38d   : > { %v1957_v4 = vpop.f32.mrf.mxu0  ;;  %v1977_v6 = vpop.f32.mrf.mxu1 }
 0x38e   : > { %v1980_v7 = vadd.f32 %v1957_v4, %v1925_v2  ;;  %v1981_v8 = vadd.f32 %v1977_v6, %v1926_v3  ;;  %v2012_v4 = vld [vmem:[%s3563_s7] sm:$0xf]  ;;  %v2799_v6 = vld [vmem:[%s3563_s7 + $0x10] sm:$0xf] }
 0x390   : > { %v1988_v10 = vadd.f32 %v1986_v9, %v1980_v7  ;;  %v1989_v11 = vadd.f32 %v1986_v9, %v1981_v8 }
 0x392   : > { %v1991_v12 = vmax.f32 %v1989_v11, 0.0  ;;  %v1990_v13 = vmax.f32 %v1988_v10, 0.0  ;;  %v2809_v11 = vld [vmem:[%s3563_s7 + $0x18] sm:$0xf] }
 0x394   : > { %v1994_v14 = vrot.slane %v1991_v12, 4 }
 0x396   : > { %v1995_v15 = vsel %vm3617_vm6, %v1990_v13, %v1994_v14  ;;  %vm3623_vm6 = vcmask 31744  }
 0x397   : > { %v1997_v16 = vadd.f32 %v1995_v15, %v2931_v0  ;;  %vm3624_vm14 = vmmov %vm3623_vm6 }
 0x399   : > { %1999 = vst [vmem:[#allocation1] ss:$2 sm:$0xff] %v1997_v16 }
 0x3a0   : > { %v2000_v17 = vld.sshfl [vmem:[#allocation1] sm:$0xff pattern:$0x75316420]  ;;  %v2001_v18 = vld.sshfl [vmem:[#allocation1 + $0x8] sm:$0xff pattern:$0x75316420] }
 0x3a1   : > { %2013 = vst [vmem:[#allocation1] ss:$2 sm:$0xff] %v1997_v16 }
 0x3a8   : > { %v2015_v22 = vld.sshfl [vmem:[#allocation1 + $0x8] sm:$0xff pattern:$0x75316420]  ;;  %v2014_v23 = vld.sshfl [vmem:[#allocation1] sm:$0xff pattern:$0x75316420] }
 0x3a9   : > { %2020 = vrot.lane.b32.xlu2 %v2015_v22, %s2857_s16  ;;  %2018 = vrot.lane.b32.xlu1 %v2014_v23, %s2857_s16  ;;  %2126 = vst [vmem:[#allocation1] ss:$2 sm:$0xff] %v1997_v16 }
 0x3b0   : > { %v2128_v24 = vld.sshfl [vmem:[#allocation1 + $0x8] sm:$0xff pattern:$0x75316420]  ;;  %v2127_v25 = vld.sshfl [vmem:[#allocation1] sm:$0xff pattern:$0x75316420] }
 0x3b1   : > { %2004 = vrot.lane.b32.xlu2 %v2000_v17, %s2856_s15  ;;  %2133 = vrot.lane.b32.xlu1 %v2128_v24, %s2858_s17  ;;  %2192 = vst [vmem:[#allocation1] ss:$2 sm:$0xff] %v1997_v16 }
 0x3b2   : > { %2131 = vrot.lane.b32.xlu0 %v2127_v25, %s2858_s17 }
 0x3b8   : > { %v2194_v0 = vld.sshfl [vmem:[#allocation1 + $0x8] sm:$0xff pattern:$0x75316420]  ;;  %v2193_v29 = vld.sshfl [vmem:[#allocation1] sm:$0xff pattern:$0x75316420] }
 0x3b9   : > { %2199 = vrot.lane.b32.xlu2 %v2194_v0, %s2859_s18  ;;  %2197 = vrot.lane.b32.xlu1 %v2193_v29, %s2859_s18  ;;  %2260 = vst [vmem:[#allocation1] ss:$2 sm:$0xff] %v1997_v16 }
 0x3ba   : > { %2006 = vrot.lane.b32.xlu0 %v2001_v18, %s2856_s15 }
 0x3c0   : > { %v2261_v30 = vld.sshfl [vmem:[#allocation1] sm:$0xff pattern:$0x75316420]  ;;  %v2262_v31 = vld.sshfl [vmem:[#allocation1 + $0x8] sm:$0xff pattern:$0x75316420] }
 0x3c1   : > { %2312 = vst [vmem:[#allocation1] ss:$2 sm:$0xff] %v1997_v16 }
 0x3c8   : > { %v2314_v32 = vld.sshfl [vmem:[#allocation1 + $0x8] sm:$0xff pattern:$0x75316420]  ;;  %v2313_v33 = vld.sshfl [vmem:[#allocation1] sm:$0xff pattern:$0x75316420] }
 0x3c9   : > { %2317 = vrot.lane.b32.xlu2 %v2313_v33, %s2860_s19  ;;  %2378 = vst [vmem:[#allocation1] ss:$2 sm:$0xff] %v1997_v16 }
 0x3d0   : > { %v2380_v34 = vld.sshfl [vmem:[#allocation1 + $0x8] sm:$0xff pattern:$0x75316420]  ;;  %v2379_v35 = vld.sshfl [vmem:[#allocation1] sm:$0xff pattern:$0x75316420] }
 0x3d1   : > { %2385 = vrot.lane.b32.xlu1 %v2380_v34, %s2861_s20  ;;  %2383 = vrot.lane.b32.xlu0 %v2379_v35, %s2861_s20  ;;  %2444 = vst [vmem:[#allocation1] ss:$2 sm:$0xff] %v1997_v16 }
 0x3d8   : > { %v2446_v36 = vld.sshfl [vmem:[#allocation1 + $0x8] sm:$0xff pattern:$0x75316420]  ;;  %v2445_v38 = vld.sshfl [vmem:[#allocation1] sm:$0xff pattern:$0x75316420] }
 0x3d9   : > { %2319 = vrot.lane.b32.xlu0 %v2314_v32, %s2860_s19  ;;  %2510 = vst [vmem:[#allocation1] ss:$2 sm:$0xff] %v1997_v16  ;;  %v2814_v32 = vld [vmem:[%s3563_s7 + $0x1c] sm:$0xf]  ;;  %s332_s19 = scalar_lea.vmem %s3565_s9, %s2826_s11 }
 0x3e0   : > { %v2512_v40 = vld.sshfl [vmem:[#allocation1 + $0x8] sm:$0xff pattern:$0x75316420]  ;;  %v2511_v42 = vld.sshfl [vmem:[#allocation1] sm:$0xff pattern:$0x75316420] }
 0x3e1   : > { %2449 = vrot.lane.b32.xlu0 %v2445_v38, %s2862_s21  ;;  %2517 = vrot.lane.b32.xlu2 %v2512_v40, %s2863_s22 }
 0x3e2   : > { %2515 = vrot.lane.b32.xlu1 %v2511_v42, %s2863_s22 }
 0x3e9   : > { %2579 = vperm.xlu2 %2847, %v2576_v28  }
 0x3ea   : > { %2451 = vrot.lane.b32.xlu1 %v2446_v36, %s2862_s21 }
 0x403   : > { %v2021_v43 = vpop.permute.xlu2 %2020 }
 0x40b   : > { %v2005_v49 = vpop.permute.xlu2 %2004 }
 0x413   : > { %v2200_v41 = vpop.permute.xlu2 %2199 }
 0x41b   : > { %v2019_v44 = vpop.permute.xlu1 %2018 }
 0x41c   : > { %v2022_v46 = vsel %vm3618_vm5, %v2019_v44, %v2021_v43  ;;  %v2023_v47 = vsel %vm3619_vm7, %v2021_v43, %v2019_v44  ;;  %vm3626_vm5 = vmmov %vm3625_vm15 }
 0x41d   : > { %v2024_v48 = vsel %vm3620_vm12, %v2023_v47, 0.0  ;;  %2783 = vmatpush.msk.msrb.mxu3 %vm3621_vm0, %v2022_v46  ;;  %vm3628_vm7 = vmmov %vm3621_vm0 }
 0x41e   : > { %2781 = vmatpush.msk.msrb.mxu2 %vm3622_vm9, %v2024_v48  ;;  %2784 = vmatmul.msk.f32.vlgmr.msrb.gmra.mxu3 %vm3623_vm6, %v2780_v45  ;;  %vm3629_vm12 = vmmov %vm3621_vm0 }
 0x41f   : > { %2782 = vmatmul.msk.f32.vlgmr.msrb.gmra.mxu2 %vm3624_vm14, %v2780_v45  ;;  %vm3627_vm14 = vmmov %vm3621_vm0 }
 0x423   : > { %v2134_v50 = vpop.permute.xlu1 %2133  ;;  %v2318_v14 = vpop.permute.xlu2 %2317 }
 0x424   : > { %v2132_v51 = vpop.permute.xlu0 %2131 }
 0x425   : > { %v2135_v52 = vsel %vm3625_vm15, %v2132_v51, %v2134_v50  ;;  %v2136_v53 = vsel %vm3626_vm5, %v2134_v50, %v2132_v51  ;;  %vm3630_vm15 = vmmov %vm3621_vm0  ;;  %vm3635_vm5 = vcmp.lt.s32.totalorder %v2962_v20, 17 }
 0x426   : > { %v2137_v54 = vsel %vm3020_vm11, %v2136_v53, 0.0  ;;  %v2138_v55 = vsel %vm3010_vm10, %v2135_v52, 0.0  ;;  %vm3631_vm0 = vmmov %vm3623_vm6  ;;  %vm3633_vm11 = vcmp.lt.s32.totalorder %v2962_v20, 1 }
 0x427   : > { %2790 = vmatpush.msk.msra.mxu2 %vm3627_vm14, %v2137_v54  ;;  %2792 = vmatpush.msk.msra.mxu3 %vm3628_vm7, %v2138_v55  ;;  %vm3632_vm9 = vmmov %vm3631_vm0 }
 0x428   : > { %2793 = vmatmul.msk.f32.vlgmr.msra.gmra.mxu3 %vm3631_vm0, %v2789_v56  ;;  %2791 = vmatmul.msk.f32.vlgmr.msra.gmra.mxu2 %vm3632_vm9, %v2789_v56  ;;  %vm3634_vm6 = vmmov %vm3633_vm11 }
 0x429   : > { %2800 = vmatpush.msk.msrb.mxu2 %vm3629_vm12, %v2261_v30  ;;  %2802 = vmatpush.msk.msrb.mxu3 %vm3630_vm15, %v2262_v31  ;;  %vm3636_vm14 = vmmov %vm3635_vm5 }
 0x42a   : > { %vm3637_vm12 = vmmov %vm3628_vm7 }
 0x42b   : > { %v2198_v57 = vpop.permute.xlu1 %2197  ;;  %vm3638_vm15 = vmmov %vm3628_vm7 }
 0x42c   : > { %v2007_v58 = vpop.permute.xlu0 %2006  ;;  %v2201_v59 = vsel %vm3633_vm11, %v2198_v57, %v2200_v41  ;;  %v2202_v60 = vsel %vm3634_vm6, %v2200_v41, %v2198_v57  ;;  %vm3639_vm0 = vmmov %vm3628_vm7 }
 0x42d   : > { %v2008_v61 = vsel %vm3635_vm5, %v2005_v49, %v2007_v58  ;;  %v2009_v62 = vsel %vm3636_vm14, %v2007_v58, %v2005_v49  ;;  %v2203_v63 = vsel %vm2970_vm1, %v2202_v60, 0.0  ;;  %v2204_v1 = vsel %vm2975_vm3, %v2201_v59, 0.0 }
 0x42e   : > { %v2010_v2 = vsel %vm2983_vm4, %v2009_v62, 0.0  ;;  %v2011_v3 = vsel %vm2975_vm3, %v2008_v61, 0.0  ;;  %vm3640_vm4 = vmmov %vm3632_vm9  ;;  %vm3646_vm14 = vcmp.lt.s32.totalorder %v2962_v20, 113 }
 0x42f   : > { %2785 = vmatpush.msk.msra.mxu0 %vm3628_vm7, %v2010_v2  ;;  %2787 = vmatpush.msk.msra.mxu1 %vm3637_vm12, %v2011_v3  ;;  %vm3641_vm9 = vmmov %vm3640_vm4 }
 0x430   : > { %2788 = vmatmul.msk.f32.vlgmr.msra.gmra.mxu1 %vm3640_vm4, %v2012_v4  ;;  %2786 = vmatmul.msk.f32.vlgmr.msra.gmra.mxu0 %vm3641_vm9, %v2012_v4  ;;  %vm3642_vm3 = vmmov %vm3640_vm4  ;;  %vm3652_vm9 = vcmp.lt.s32.totalorder %v2962_v20, 127 }
 0x431   : > { %2795 = vmatpush.msk.msrb.mxu0 %vm3638_vm15, %v2203_v63  ;;  %2797 = vmatpush.msk.msrb.mxu1 %vm3639_vm0, %v2204_v1  ;;  %vm3643_vm11 = vmmov %vm3642_vm3 }
 0x432   : > { %2803 = vmatmul.msk.f32.vlgmr.msrb.gmra.mxu3 %vm3642_vm3, %v2799_v6  ;;  %2801 = vmatmul.msk.f32.vlgmr.msrb.gmra.mxu2 %vm3643_vm11, %v2799_v6  ;;  %vm3644_vm6 = vmmov %vm3642_vm3 }
 0x433   : > { %vm3645_vm5 = vmmov %vm3642_vm3 }
 0x434   : > { %vm3647_vm7 = vmmov %vm3646_vm14 }
 0x435   : > { %vm3648_vm12 = vmmov %vm3639_vm0 }
 0x436   : > { %vm3649_vm15 = vmmov %vm3639_vm0 }
 0x437   : > { %vm3650_vm0 = vmmov %vm3642_vm3 }
 0x438   : > { %2798 = vmatmul.msk.f32.vlgmr.msrb.gmra.mxu1 %vm3644_vm6, %v2794_v27  ;;  %2796 = vmatmul.msk.f32.vlgmr.msrb.gmra.mxu0 %vm3645_vm5, %v2794_v27  ;;  %vm3651_vm4 = vmmov %vm3650_vm0  ;;  %vm3658_vm5 = vcmp.lt.s32.totalorder %v2962_v20, 111 }
 0x439   : > { %vm3653_vm3 = vmmov %vm3652_vm9 }
 0x43a   : > { %vm3656_vm11 = vmmov %vm3650_vm0 }
 0x43b   : > { %vm3657_vm6 = vmmov %vm3650_vm0  ;;  %v2518_v22 = vpop.permute.xlu2 %2517 }
 0x443   : > { %v2386_v7 = vpop.permute.xlu1 %2385  ;;  %v2384_v8 = vpop.permute.xlu0 %2383 }
 0x444   : > { %v2387_v9 = vsel %vm3646_vm14, %v2384_v8, %v2386_v7  ;;  %v2388_v10 = vsel %vm3647_vm7, %v2386_v7, %v2384_v8  ;;  %vm3659_vm14 = vmmov %vm3658_vm5  ;;  %v2580_v4 = vpop.permute.xlu2 %2579 }
 0x445   : > { %v2389_v12 = vsel %vm2970_vm1, %v2387_v9, 0.0  ;;  %v2390_v13 = vsel %vm3098_vm13, %v2388_v10, 0.0  ;;  %vm3654_vm1 = vmmov %vm3648_vm12 }
 0x446   : > { %2810 = vmatpush.msk.msra.mxu2 %vm3648_vm12, %v2389_v12  ;;  %2812 = vmatpush.msk.msra.mxu3 %vm3649_vm15, %v2390_v13  ;;  %vm3655_vm13 = vmmov %vm3654_vm1 }
 0x447   : > { %2813 = vmatmul.msk.f32.vlgmr.msra.gmra.mxu3 %vm3650_vm0, %v2809_v11  ;;  %2811 = vmatmul.msk.f32.vlgmr.msra.gmra.mxu2 %vm3651_vm4, %v2809_v11  ;;  %vm3661_vm7 = vmmov %vm3654_vm1 }
 0x448   : > { %vm3662_vm12 = vmmov %vm3650_vm0 }
 0x449   : > { %vm3663_vm15 = vmmov %vm3650_vm0  ;;  %vm3664_vm0 = vcmp.lt.s32.totalorder %v2962_v20, 112 }
 0x44a   : > { %vm3667_vm4 = vmmov %vm3654_vm1 }
 0x44b   : > { %v2320_v15 = vpop.permute.xlu0 %2319 }
 0x44c   : > { %v2321_v16 = vsel %vm3652_vm9, %v2318_v14, %v2320_v15  ;;  %v2322_v26 = vsel %vm3653_vm3, %v2320_v15, %v2318_v14  ;;  %vm3668_vm9 = vmmov %vm3657_vm6 }
 0x44d   : > { %v2323_v17 = vsel %vm3003_vm8, %v2321_v16, 0.0  ;;  %v2324_v18 = vsel %vm3010_vm10, %v2322_v26, 0.0  ;;  %vm3660_vm10 = vmmov %vm3654_vm1 }
 0x44e   : > { %2805 = vmatpush.msk.msra.mxu0 %vm3654_vm1, %v2323_v17  ;;  %2807 = vmatpush.msk.msra.mxu1 %vm3655_vm13, %v2324_v18  ;;  %vm3669_vm3 = vmmov %vm3654_vm1 }
 0x44f   : > { %2808 = vmatmul.msk.f32.vlgmr.msra.gmra.mxu1 %vm3656_vm11, %v2804_v5  ;;  %2806 = vmatmul.msk.f32.vlgmr.msra.gmra.mxu0 %vm3657_vm6, %v2804_v5  ;;  %vm3670_vm1 = vmmov %vm3657_vm6 }
 0x450   : > { %vm3671_vm13 = vmmov %vm3669_vm3 }
 0x453   : > { %v2450_v30 = vpop.permute.xlu0 %2449 }
 0x454   : > { %v2516_v23 = vpop.permute.xlu1 %2515 }
 0x455   : > { %v2519_v24 = vsel %vm3658_vm5, %v2516_v23, %v2518_v22  ;;  %v2520_v25 = vsel %vm3659_vm14, %v2518_v22, %v2516_v23 }
 0x456   : > { %v2521_v0 = vsel %vm3003_vm8, %v2519_v24, 0.0  ;;  %v2522_v29 = vsel %vm3136_vm2, %v2520_v25, 0.0  ;;  %vm3665_vm8 = vmmov %vm3664_vm0  ;;  %vm3666_vm2 = vcmp.lt.s32.totalorder %v2965_v21, 240 }
 0x457   : > { %2820 = vmatpush.msk.msrb.mxu2 %vm3660_vm10, %v2521_v0  ;;  %2822 = vmatpush.msk.msrb.mxu3 %vm3661_vm7, %v2522_v29 }
 0x458   : > { %2821 = vmatmul.msk.f32.vlgmr.msrb.gmra.mxu2 %vm3662_vm12, %v2819_v39  ;;  %2823 = vmatmul.msk.f32.vlgmr.msrb.gmra.mxu3 %vm3663_vm15, %v2819_v39 }
 0x45c   : > { %v2452_v31 = vpop.permute.xlu1 %2451 }
 0x45d   : > { %v2453_v37 = vsel %vm3664_vm0, %v2450_v30, %v2452_v31  ;;  %v2454_v19 = vsel %vm3665_vm8, %v2452_v31, %v2450_v30 }
 0x45e   : > { %v2456_v33 = vsel %vm3666_vm2, %v2454_v19, 0.0  ;;  %2815 = vmatpush.msk.msrb.mxu0 %vm3667_vm4, %v2453_v37 }
 0x45f   : > { %2816 = vmatmul.msk.f32.vlgmr.msrb.gmra.mxu0 %vm3668_vm9, %v2814_v32  ;;  %2817 = vmatpush.msk.msrb.mxu1 %vm3669_vm3, %v2456_v33 }
 0x460   : > { %2818 = vmatmul.msk.f32.vlgmr.msrb.gmra.mxu1 %vm3670_vm1, %v2814_v32 }
 0x4a1   : > { %v2074_v35 = vpop.f32.mrf.mxu3 }
 0x4a2   : > { %v2054_v34 = vpop.f32.mrf.mxu2 }
 0x4ab   : > { %v2167_v38 = vpop.f32.mrf.mxu2  ;;  %v2187_v42 = vpop.f32.mrf.mxu3 }
 0x4ad   : > { %v2103_v36 = vpop.f32.mrf.mxu0  ;;  %v2123_v40 = vpop.f32.mrf.mxu1 }
 0x4ae   : > { %v2104_v43 = vadd.f32 %v2103_v36, %v2054_v34  ;;  %v2124_v20 = vadd.f32 %v2123_v40, %v2074_v35 }
 0x4b0   : > { %v2190_v21 = vadd.f32 %v2167_v38, %v2104_v43  ;;  %v2191_v48 = vadd.f32 %v2187_v42, %v2124_v20 }
 0x4b5   : > { %v2233_v44 = vpop.f32.mrf.mxu0  ;;  %v2287_v45 = vpop.f32.mrf.mxu2 }
 0x4b6   : > { %v2253_v46 = vpop.f32.mrf.mxu1  ;;  %v2307_v47 = vpop.f32.mrf.mxu3  ;;  %v2256_v49 = vadd.f32 %v2233_v44, %v2190_v21 }
 0x4b7   : > { %v2257_v50 = vadd.f32 %v2253_v46, %v2191_v48 }
 0x4b8   : > { %v2310_v53 = vadd.f32 %v2287_v45, %v2256_v49 }
 0x4b9   : > { %v2311_v56 = vadd.f32 %v2307_v47, %v2257_v50 }
 0x4ca   : > { %v2419_v52 = vpop.f32.mrf.mxu2  ;;  %v2439_v55 = vpop.f32.mrf.mxu3 }
 0x4cc   : > { %v2353_v51 = vpop.f32.mrf.mxu0  ;;  %v2373_v54 = vpop.f32.mrf.mxu1 }
 0x4cd   : > { %v2376_v41 = vadd.f32 %v2353_v51, %v2310_v53  ;;  %v2377_v57 = vadd.f32 %v2373_v54, %v2311_v56 }
 0x4cf   : > { %v2442_v58 = vadd.f32 %v2419_v52, %v2376_v41  ;;  %v2443_v59 = vadd.f32 %v2439_v55, %v2377_v57 }
 0x4db   : > { %v2551_v61 = vpop.f32.mrf.mxu2  ;;  %v2571_v1 = vpop.f32.mrf.mxu3 }
 0x4dc   : > { %v2485_v60 = vpop.f32.mrf.mxu0 }
 0x4dd   : > { %v2508_v62 = vadd.f32 %v2485_v60, %v2442_v58  ;;  %v2505_v63 = vpop.f32.mrf.mxu1 }
 0x4de   : > { %v2509_v2 = vadd.f32 %v2505_v63, %v2443_v59 }
 0x4df   : > { %v2574_v3 = vadd.f32 %v2551_v61, %v2508_v62 }
 0x4e0   : > { %v2575_v6 = vadd.f32 %v2571_v1, %v2509_v2 }
 0x4e1   : > { %v2582_v27 = vadd.f32 %v2580_v4, %v2574_v3 }
 0x4e2   : > { %v2583_v28 = vadd.f32 %v2580_v4, %v2575_v6 }
 0x4e3   : > { %v2584_v8 = vmax.f32 %v2582_v27, 0.0 }
 0x4e4   : > { %v2585_v7 = vmax.f32 %v2583_v28, 0.0 }
 0x4e6   : > { %v2588_v9 = vrot.slane %v2585_v7, 4 }
 0x4e8   : > { %v2589_v10 = vsel %vm3671_vm13, %v2584_v8, %v2588_v9 }
 0x4e9   : > { %2591 = vst [vmem:[%s332_s19] sm:$0xff] %v2589_v10 }
 0x4ea PF: > { %s19_s30 = sadd.s32 1, %s2854_s30  }
 0x4eb   : > { %p16_p4 = scmp.ge.s32.totalorder %s19_s30, 4  }
 0x4ed   :  { %18 = sbr.rel (!%p16_p4) target bundleno = 1 (0x1), region = 118 }

</bundles_post_ra>
